<compile_context>
chip_gen: v6e
topology: v6e:2x2x1
jax: 0.10.0
libtpu: 0.0.40
codegen_flags: <defaults>
</compile_context>

<pallas_src>
import numpy as np
import jax
import jax.numpy as jnp
from jax import lax
from jax.experimental import pallas as pl
from jax.experimental.pallas import tpu as pltpu


def _round_up(x, m):
    return ((x + m - 1) // m) * m


def _num_tensorcores_per_chip():
    """2 TensorCores per chip on v7x, 1 on v5e/v6e (trace-time heuristic)."""
    try:
        kind = jax.devices()[0].device_kind.lower()
    except Exception:
        return 1
    return 2 if "v7" in kind else 1


def _make_kernel(HD):
    """Fused (im2col-matmul + f32 bias + gates + LSTM state update) body."""

    def kernel(w_ref, b_ref, x_ref, c_ref, h_out_ref, c_out_ref):
        # w_ref : (4*HD, Kp)  conv weight rows, zero-padded K   (bf16)
        # b_ref : (4*HD, 1)   bias                              (f32)
        # x_ref : (Kp,   TN)  im2col activations, zero-padded K (bf16)
        # c_ref : (HD,   TN)  c_cur  (channels on sublanes, spatial on lanes)
        # outs  : (HD,   TN)  h_next, c_next (f32)
        acc = jnp.dot(w_ref[...], x_ref[...],
                      preferred_element_type=jnp.float32)       # (4*HD, TN) f32
        acc = acc + b_ref[...]                                  # f32 bias bcast

        # One EUP sigmoid stream over the contiguous i|f|o block, tanh for g.
        # Slices are sublane-aligned (HD % 8 == 0) -> no relayout.
        ifo = jax.nn.sigmoid(acc[0:3 * HD, :])
        g = jnp.tanh(acc[3 * HD:4 * HD, :])
        i = ifo[0 * HD:1 * HD, :]
        f = ifo[1 * HD:2 * HD, :]
        o = ifo[2 * HD:3 * HD, :]

        c_next = f * c_ref[...] + i * g
        h_next = o * jnp.tanh(c_next)

        h_out_ref[...] = h_next.astype(h_out_ref.dtype)
        c_out_ref[...] = c_next.astype(c_out_ref.dtype)

    return kernel


def prepare_weights(weight_oihw, bias, kernel_size, matmul_dtype=jnp.bfloat16):
    """One-time (per sequence) weight prep: reorder, pad K, cast; f32 bias."""
    KH, KW = kernel_size
    O, Cc, _, _ = weight_oihw.shape
    K = KH * KW * Cc
    Kp = _round_up(K, 128)
    # Column layout matches the channel-major im2col rows: col = (dy*KW+dx)*Cc + c
    w2 = weight_oihw.transpose(0, 2, 3, 1).reshape(O, K)
    if Kp > K:
        w2 = jnp.pad(w2, ((0, 0), (0, Kp - K)))
    w2 = w2.astype(matmul_dtype)
    b2 = bias.reshape(O, 1).astype(jnp.float32)
    return w2, b2, Kp


def convlstm_cell_forward_cm(x_cm, h_cm, c_flat, w2, b2, kernel_size, Kp, *,
                             matmul_dtype=jnp.bfloat16, spatial_tile=None):
    """Per-timestep cell on channel-major tensors (no NCHW transposes here).

    x_cm:   (Cin, B, H, W)      h_cm: (HD, B, H, W)      c_flat: (HD, B*H*W)
    w2:     (4*HD, Kp) bf16     b2:   (4*HD, 1) f32
    Returns h_next_cm (HD, B, H, W) and c_next_flat (HD, B*H*W), both f32.
    """
    KH, KW = kernel_size
    ph, pw = KH // 2, KW // 2
    Cin, B, H, W = x_cm.shape
    HD = h_cm.shape[0]
    Cc = Cin + HD
    M = B * H * W
    K = KH * KW * Cc

    # ---- wrapper-side glue (fused by XLA): bf16 im2col, channel-major -------
    combined = jnp.concatenate([x_cm, h_cm], axis=0).astype(matmul_dtype)  # (Cc,B,H,W)
    combined_p = jnp.pad(combined, ((0, 0), (0, 0), (ph, ph), (pw, pw)))
    taps = [combined_p[:, :, dy:dy + H, dx:dx + W]
            for dy in range(KH) for dx in range(KW)]           # KH*KW x (Cc,B,H,W)
    # row = (dy*KW + dx)*Cc + c  -- matches w2's column ordering; no transpose.
    xt = jnp.stack(taps, axis=0).reshape(K, M)                 # (K, B*H*W) bf16

    # ---- tile / grid: lane-dense, generation aware ---------------------------
    if spatial_tile is None:
        n_cores = _num_tensorcores_per_chip()
        max_tile = 2048                      # bounds per-step VMEM for huge B*H*W
        target = max(128, min(max_tile, -(-M // n_cores)))
        tn = min(_round_up(target, 128), max_tile)
    else:
        tn = _round_up(spatial_tile, 128)
    Mp = _round_up(M, tn)                    # pad M instead of unbounded fallback
    grid = (Mp // tn,)

    pad_k, pad_m = Kp - K, Mp - M
    if pad_k or pad_m:
        xt = jnp.pad(xt, ((0, pad_k), (0, pad_m)))
    c_in = jnp.pad(c_flat, ((0, 0), (0, pad_m))) if pad_m else c_flat

    cost = pl.CostEstimate(
        flops=2 * Mp * Kp * 4 * HD,
        transcendentals=5 * Mp * HD,
        bytes_accessed=(xt.size * xt.dtype.itemsize
                        + w2.size * w2.dtype.itemsize
                        + b2.size * 4 + c_in.size * 4 + 2 * HD * Mp * 4),
    )

    h_flat, c_next_flat = pl.pallas_call(
        _make_kernel(HD),
        out_shape=(jax.ShapeDtypeStruct((HD, Mp), jnp.float32),
                   jax.ShapeDtypeStruct((HD, Mp), jnp.float32)),
        grid_spec=pltpu.PrefetchScalarGridSpec(
            num_scalar_prefetch=0,
            grid=grid,
            in_specs=[
                pl.BlockSpec((4 * HD, Kp), lambda n: (0, 0)),   # weight (grid-invariant)
                pl.BlockSpec((4 * HD, 1), lambda n: (0, 0)),    # bias (f32)
                pl.BlockSpec((Kp, tn), lambda n: (0, n)),       # im2col tile
                pl.BlockSpec((HD, tn), lambda n: (0, n)),       # c_cur tile
            ],
            out_specs=[
                pl.BlockSpec((HD, tn), lambda n: (0, n)),       # h_next
                pl.BlockSpec((HD, tn), lambda n: (0, n)),       # c_next
            ],
        ),
        compiler_params=pltpu.CompilerParams(
            dimension_semantics=("parallel",)),
        cost_estimate=cost,
    )(w2, b2, xt, c_in)

    if pad_m:
        h_flat = h_flat[:, :M]
        c_next_flat = c_next_flat[:, :M]
    h_next_cm = h_flat.reshape(HD, B, H, W)
    return h_next_cm, c_next_flat


def convlstm_cell_forward(x_nchw, h_nchw, c_nchw, weight_oihw, bias,
                          kernel_size, *, matmul_dtype=jnp.bfloat16,
                          spatial_tile=None):
    """ConvLSTMCell.forward with NCHW (PyTorch) inputs/outputs.

    The NCHW <-> channel-major conversion and weight prep live only here, at
    the boundary; a sequence loop should call `convlstm_cell_forward_cm`
    directly and convert once per sequence.
    """
    B, Cin, H, W = x_nchw.shape
    HD = h_nchw.shape[1]
    M = B * H * W

    w2, b2, Kp = prepare_weights(weight_oihw, bias, kernel_size, matmul_dtype)

    x_cm = x_nchw.transpose(1, 0, 2, 3)                        # (Cin, B, H, W)
    h_cm = h_nchw.transpose(1, 0, 2, 3)                        # (HD,  B, H, W)
    c_flat = c_nchw.transpose(1, 0, 2, 3).reshape(HD, M)       # (HD,  B*H*W)

    h_next_cm, c_next_flat = convlstm_cell_forward_cm(
        x_cm, h_cm, c_flat, w2, b2, kernel_size, Kp,
        matmul_dtype=matmul_dtype, spatial_tile=spatial_tile)

    h_next = h_next_cm.transpose(1, 0, 2, 3)
    c_next = c_next_flat.reshape(HD, B, H, W).transpose(1, 0, 2, 3)
    return h_next, c_next


def reference_forward(x_nchw, h_nchw, c_nchw, weight_oihw, bias, kernel_size,
                      conv_dtype=jnp.float32):
    """Pure-JAX reference of the PyTorch forward (conv inputs in conv_dtype)."""
    KH, KW = kernel_size
    ph, pw = KH // 2, KW // 2
    combined = jnp.concatenate([x_nchw, h_nchw], axis=1)              # NCHW
    out = lax.conv_general_dilated(
        combined.astype(conv_dtype), weight_oihw.astype(conv_dtype),
        window_strides=(1, 1), padding=[(ph, ph), (pw, pw)],
        dimension_numbers=("NCHW", "OIHW", "NCHW"),
        preferred_element_type=jnp.float32)
    out = out + bias.reshape(1, -1, 1, 1)
    cc_i, cc_f, cc_o, cc_g = jnp.split(out, 4, axis=1)
    i = jax.nn.sigmoid(cc_i)
    f = jax.nn.sigmoid(cc_f)
    o = jax.nn.sigmoid(cc_o)
    g = jnp.tanh(cc_g)
    c_next = f * c_nchw + i * g
    h_next = o * jnp.tanh(c_next)
    return h_next, c_next


if __name__ == "__main__":
    # module config: input_size=(16,16), input_dim=4, hidden_dim=32,
    # kernel_size=(3,3), bias=True
    B, Cin, H, W = 2, 4, 16, 16
    HD = 32
    KH, KW = 3, 3
    Cc = Cin + HD

    # deterministic parameter init mimicking weights_init + relu gain
    np.random.seed(0)
    fan_in = Cc * KH * KW
    fan_out = KH * KW * 4 * HD
    w_bound = np.sqrt(6.0 / (fan_in + fan_out))
    weight = np.random.uniform(-w_bound, w_bound,
                               size=(4 * HD, Cc, KH, KW)).astype(np.float32)
    weight *= np.sqrt(2.0)                                # relu gain
    b_bound = 1.0 / np.sqrt(fan_in)                       # Conv2d default bias init
    bias = np.random.uniform(-b_bound, b_bound,
                             size=(4 * HD,)).astype(np.float32)
    weight = jnp.asarray(weight)
    bias = jnp.asarray(bias)

    key = jax.random.PRNGKey(0)
    kx, kh, kc = jax.random.split(key, 3)
    x = jax.random.normal(kx, (B, Cin, H, W), jnp.float32)
    h_cur = jax.random.normal(kh, (B, HD, H, W), jnp.float32)
    c_cur = jax.random.normal(kc, (B, HD, H, W), jnp.float32)

    fwd = jax.jit(convlstm_cell_forward, static_argnames=("kernel_size",))
    h_next, c_next = fwd(x, h_cur, c_cur, weight, bias, kernel_size=(KH, KW))
    jax.block_until_ready((h_next, c_next))

    # Matched-precision check: reference conv is also fed bf16 inputs with f32
    # accumulation and an f32 bias add (same rounding as the kernel path).
    h_ref, c_ref = reference_forward(x, h_cur, c_cur, weight, bias, (KH, KW),
                                     conv_dtype=jnp.bfloat16)
    np.testing.assert_allclose(np.asarray(h_next), np.asarray(h_ref),
                               atol=2e-3, rtol=2e-3)
    np.testing.assert_allclose(np.asarray(c_next), np.asarray(c_ref),
                               atol=2e-3, rtol=2e-3)

    # Loose sanity check against the full-f32 module semantics (bf16 MXU inputs
    # introduce ~1e-2-level deviations at most).
    h_f32, c_f32 = reference_forward(x, h_cur, c_cur, weight, bias, (KH, KW))
    np.testing.assert_allclose(np.asarray(h_next), np.asarray(h_f32),
                               atol=5e-2, rtol=5e-2)
    np.testing.assert_allclose(np.asarray(c_next), np.asarray(c_f32),
                               atol=5e-2, rtol=5e-2)

    print("KERNEL_OK")
</pallas_src>

<mosaic_0001>
module attributes {stable_mosaic.version = 11 : i64} {
  func.func @kernel(%arg0: i32, %arg1: memref<128x384xbf16, #tpu.memory_space<vmem>>, %arg2: memref<128x1xf32, #tpu.memory_space<vmem>>, %arg3: memref<384x512xbf16, #tpu.memory_space<vmem>>, %arg4: memref<32x512xf32, #tpu.memory_space<vmem>>, %arg5: memref<32x512xf32, #tpu.memory_space<vmem>>, %arg6: memref<32x512xf32, #tpu.memory_space<vmem>>) attributes {dimension_semantics = [#tpu.dimension_semantics<parallel>], iteration_bounds = array<i64: 1>, scalar_prefetch = 0 : i64, scratch_operands = 0 : i64, tpu.core_type = #tpu.core_type<tc>, window_params = [{pipeline_mode = #tpu.pipeline_mode<synchronous>, transform_indices = @transform_0, window_bounds = array<i64: 128, 384>}, {pipeline_mode = #tpu.pipeline_mode<synchronous>, transform_indices = @transform_1, window_bounds = array<i64: 128, 1>}, {transform_indices = @transform_2, window_bounds = array<i64: 384, 512>}, {transform_indices = @transform_3, window_bounds = array<i64: 32, 512>}, {transform_indices = @transform_4, window_bounds = array<i64: 32, 512>}, {transform_indices = @transform_5, window_bounds = array<i64: 32, 512>}]} {
    %c0 = arith.constant 0 : index
    %c0_0 = arith.constant 0 : index
    %0 = vector.load %arg1[%c0, %c0_0] : memref<128x384xbf16, #tpu.memory_space<vmem>>, vector<128x384xbf16>
    %c0_1 = arith.constant 0 : index
    %c0_2 = arith.constant 0 : index
    %1 = vector.load %arg3[%c0_1, %c0_2] : memref<384x512xbf16, #tpu.memory_space<vmem>>, vector<384x512xbf16>
    %cst = arith.constant dense<0.000000e+00> : vector<128x512xf32>
    %2 = tpu.matmul %0, %1, %cst {dimension_numbers = #tpu.dot_dimension_numbers<[1], [0], [0], [1], [0, 0, 1, 1], [], []>} : vector<128x384xbf16>, vector<384x512xbf16>, vector<128x512xf32> -> vector<128x512xf32>
    %c0_3 = arith.constant 0 : index
    %c0_4 = arith.constant 0 : index
    %3 = vector.load %arg2[%c0_3, %c0_4] : memref<128x1xf32, #tpu.memory_space<vmem>>, vector<128x1xf32>
    %4 = vector.broadcast %3 : vector<128x1xf32> to vector<128x512xf32>
    %5 = arith.addf %2, %4 : vector<128x512xf32>
    %6 = vector.extract_strided_slice %5 {offsets = [0, 0], sizes = [96, 512], strides = [1, 1]} : vector<128x512xf32> to vector<96x512xf32>
    %7 = arith.negf %6 : vector<96x512xf32>
    %8 = math.exp %7 : vector<96x512xf32>
    %cst_5 = arith.constant 1.000000e+00 : f32
    %9 = vector.broadcast %cst_5 : f32 to vector<96x512xf32>
    %10 = arith.addf %9, %8 : vector<96x512xf32>
    %11 = arith.divf %9, %10 : vector<96x512xf32>
    %12 = vector.extract_strided_slice %5 {offsets = [96, 0], sizes = [32, 512], strides = [1, 1]} : vector<128x512xf32> to vector<32x512xf32>
    %13 = math.tanh %12 : vector<32x512xf32>
    %14 = vector.extract_strided_slice %11 {offsets = [0, 0], sizes = [32, 512], strides = [1, 1]} : vector<96x512xf32> to vector<32x512xf32>
    %15 = vector.extract_strided_slice %11 {offsets = [32, 0], sizes = [32, 512], strides = [1, 1]} : vector<96x512xf32> to vector<32x512xf32>
    %16 = vector.extract_strided_slice %11 {offsets = [64, 0], sizes = [32, 512], strides = [1, 1]} : vector<96x512xf32> to vector<32x512xf32>
    %c0_6 = arith.constant 0 : index
    %c0_7 = arith.constant 0 : index
    %17 = vector.load %arg4[%c0_6, %c0_7] : memref<32x512xf32, #tpu.memory_space<vmem>>, vector<32x512xf32>
    %18 = arith.mulf %15, %17 : vector<32x512xf32>
    %19 = arith.mulf %14, %13 : vector<32x512xf32>
    %20 = arith.addf %18, %19 : vector<32x512xf32>
    %21 = math.tanh %20 : vector<32x512xf32>
    %22 = arith.mulf %16, %21 : vector<32x512xf32>
    %c0_8 = arith.constant 0 : index
    %c0_9 = arith.constant 0 : index
    %23 = vector.load %arg5[%c0_8, %c0_9] : memref<32x512xf32, #tpu.memory_space<vmem>>, vector<32x512xf32>
    tpu.vector_store %arg5[%c0_8, %c0_9], %22 {strides = array<i32>} : memref<32x512xf32, #tpu.memory_space<vmem>>, vector<32x512xf32>,
    %c0_10 = arith.constant 0 : index
    %c0_11 = arith.constant 0 : index
    %24 = vector.load %arg6[%c0_10, %c0_11] : memref<32x512xf32, #tpu.memory_space<vmem>>, vector<32x512xf32>
    tpu.vector_store %arg6[%c0_10, %c0_11], %20 {strides = array<i32>} : memref<32x512xf32, #tpu.memory_space<vmem>>, vector<32x512xf32>,
    return
  }
  func.func @transform_0(%arg0: i32) -> (i32, i32) {
    %c0_i32 = arith.constant 0 : i32
    %c0_i32_0 = arith.constant 0 : i32
    %c0_i32_1 = arith.constant 0 : i32
    return %c0_i32, %c0_i32_0 : i32, i32
  }
  func.func @transform_1(%arg0: i32) -> (i32, i32) {
    %c0_i32 = arith.constant 0 : i32
    %c0_i32_0 = arith.constant 0 : i32
    %c0_i32_1 = arith.constant 0 : i32
    return %c0_i32, %c0_i32_0 : i32, i32
  }
  func.func @transform_2(%arg0: i32) -> (i32, i32) {
    %c0_i32 = arith.constant 0 : i32
    %c0_i32_0 = arith.constant 0 : i32
    return %c0_i32, %arg0 : i32, i32
  }
  func.func @transform_3(%arg0: i32) -> (i32, i32) {
    %c0_i32 = arith.constant 0 : i32
    %c0_i32_0 = arith.constant 0 : i32
    return %c0_i32, %arg0 : i32, i32
  }
  func.func @transform_4(%arg0: i32) -> (i32, i32) {
    %c0_i32 = arith.constant 0 : i32
    %c0_i32_0 = arith.constant 0 : i32
    return %c0_i32, %arg0 : i32, i32
  }
  func.func @transform_5(%arg0: i32) -> (i32, i32) {
    %c0_i32 = arith.constant 0 : i32
    %c0_i32_0 = arith.constant 0 : i32
    return %c0_i32, %arg0 : i32, i32
  }
}

</mosaic_0001>

<bundles_post_ra>
// kernel: convlstm_cell_forward.1
= control target key start
LH: loop header
LB: loop body
LE: loop exit
PB: predicated region body
PF: predicated region fallthrough
CT: control target
= control target key end

     0   :  { %v2363_v1 = vmov 0   ;;  %s3456_s2 = inlined_call_operand.vmem [shape: bf16[384,512], index: 2, kind: input, shape index: {}]   ;;  %s3457_s0 = inlined_call_operand.vmem [shape: bf16[128,384], index: 0, kind: input, shape index: {}]   ;;  %s3458_s1 = inlined_call_operand.vmem [shape: f32[128,1], index: 1, kind: input, shape index: {}]   ;;  %s3459_s3 = inlined_call_operand.vmem [shape: f32[32,512], index: 3, kind: input, shape index: {}]   ;;  %s3460_s5 = inlined_call_operand.vmem [shape: f32[32,512], index: 5, kind: output, shape index: {1}]   ;;  %s3461_s4 = inlined_call_operand.vmem [shape: f32[32,512], index: 4, kind: output, shape index: {0}]  }
   0x1   :  { %v1931_v0 = vld [vmem:[%s3456_s2 + $0xe4] ss:$16 sps:$4 sm:$0xff]   ;;  %997 = vmatprep.mubr.bf16.mxu1 %v2363_v1  ;;  %1929 = vset.pattern.permute.xlu0 %v2363_v1  ;;  %v1935_v3 = vld [vmem:[%s3456_s2 + $0xe0] ss:$16 sps:$4 sm:$0xff]   ;;  %v1984_v34 = vld [vmem:[%s3456_s2 + $0xec] ss:$16 sps:$4 sm:$0xff]  }
   0x2   :  { %v1933_v2 = vld [vmem:[%s3456_s2 + $0x2e4] ss:$16 sps:$4 sm:$0xff]   ;;  %1930 = vset.pattern.permute.xlu1 %v2363_v1  ;;  %852 = vmatprep.subr.bf16.mxu0 %v1931_v0  ;;  %v1936_v4 = vld [vmem:[%s3456_s2 + $0x2e0] ss:$16 sps:$4 sm:$0xff]   ;;  %v1982_v36 = vld [vmem:[%s3456_s2 + $0xe8] ss:$16 sps:$4 sm:$0xff]  }
   0x3   :  { %965 = vmatprep.subr.bf16.mxu1 %v1933_v2  ;;  %v1937_v5 = vld [vmem:[%s3456_s2 + $0xc4] ss:$16 sps:$4 sm:$0xff]   ;;  %853 = vmatpush1.bf16.msra.mxu0 %v1935_v3  ;;  %v1941_v7 = vld [vmem:[%s3456_s2 + $0xc0] ss:$16 sps:$4 sm:$0xff]   ;;  %v1990_v39 = vld [vmem:[%s3456_s2 + $0xcc] ss:$16 sps:$4 sm:$0xff]  }
   0x4   :  { %966 = vmatpush1.bf16.msra.mxu1 %v1936_v4  ;;  %v1939_v6 = vld [vmem:[%s3456_s2 + $0x2c4] ss:$16 sps:$4 sm:$0xff]   ;;  %854 = vmatprep.subr.bf16.mxu0 %v1937_v5  ;;  %v1942_v8 = vld [vmem:[%s3456_s2 + $0x2c0] ss:$16 sps:$4 sm:$0xff]   ;;  %v1988_v40 = vld [vmem:[%s3456_s2 + $0xc8] ss:$16 sps:$4 sm:$0xff]  }
   0x5   :  { %967 = vmatprep.subr.bf16.mxu1 %v1939_v6  ;;  %v1943_v9 = vld [vmem:[%s3456_s2 + $0xa4] ss:$16 sps:$4 sm:$0xff]   ;;  %v1947_v11 = vld [vmem:[%s3456_s2 + $0xa0] ss:$16 sps:$4 sm:$0xff]   ;;  %v1997_v43 = vld [vmem:[%s3456_s2 + $0xac] ss:$16 sps:$4 sm:$0xff]  }
   0x6   :  { %v1945_v10 = vld [vmem:[%s3456_s2 + $0x2a4] ss:$16 sps:$4 sm:$0xff]   ;;  %v1948_v12 = vld [vmem:[%s3456_s2 + $0x2a0] ss:$16 sps:$4 sm:$0xff]   ;;  %v1995_v45 = vld [vmem:[%s3456_s2 + $0xa8] ss:$16 sps:$4 sm:$0xff]  }
   0x7   :  { %855 = vmatpush1.bf16.msra.mxu0 %v1941_v7  ;;  %v1949_v13 = vld [vmem:[%s3456_s2 + $0x84] ss:$16 sps:$4 sm:$0xff]   ;;  %v1953_v15 = vld [vmem:[%s3456_s2 + $0x80] ss:$16 sps:$4 sm:$0xff]   ;;  %v2003_v48 = vld [vmem:[%s3456_s2 + $0x8c] ss:$16 sps:$4 sm:$0xff]  }
   0x8   :  { %968 = vmatpush1.bf16.msra.mxu1 %v1942_v8  ;;  %856 = vmatprep.subr.bf16.mxu0 %v1943_v9  ;;  %v1951_v14 = vld [vmem:[%s3456_s2 + $0x284] ss:$16 sps:$4 sm:$0xff]   ;;  %v1954_v16 = vld [vmem:[%s3456_s2 + $0x280] ss:$16 sps:$4 sm:$0xff]   ;;  %v2001_v49 = vld [vmem:[%s3456_s2 + $0x88] ss:$16 sps:$4 sm:$0xff]  }
   0x9   :  { %969 = vmatprep.subr.bf16.mxu1 %v1945_v10  ;;  %v1955_v17 = vld [vmem:[%s3456_s2 + $0x64] ss:$16 sps:$4 sm:$0xff]   ;;  %v1959_v19 = vld [vmem:[%s3456_s2 + $0x60] ss:$16 sps:$4 sm:$0xff]   ;;  %v2010_v52 = vld [vmem:[%s3456_s2 + $0x6c] ss:$16 sps:$4 sm:$0xff]  }
   0xa   :  { %v1957_v18 = vld [vmem:[%s3456_s2 + $0x264] ss:$16 sps:$4 sm:$0xff]   ;;  %v1960_v20 = vld [vmem:[%s3456_s2 + $0x260] ss:$16 sps:$4 sm:$0xff]   ;;  %v2008_v54 = vld [vmem:[%s3456_s2 + $0x68] ss:$16 sps:$4 sm:$0xff]  }
   0xb   :  { %857 = vmatpush1.bf16.msra.mxu0 %v1947_v11  ;;  %v1961_v21 = vld [vmem:[%s3456_s2 + $0x44] ss:$16 sps:$4 sm:$0xff]   ;;  %v1965_v23 = vld [vmem:[%s3456_s2 + $0x40] ss:$16 sps:$4 sm:$0xff]   ;;  %v2016_v58 = vld [vmem:[%s3456_s2 + $0x4c] ss:$16 sps:$4 sm:$0xff]  }
   0xc   :  { %970 = vmatpush1.bf16.msra.mxu1 %v1948_v12  ;;  %858 = vmatprep.subr.bf16.mxu0 %v1949_v13  ;;  %v1963_v22 = vld [vmem:[%s3456_s2 + $0x244] ss:$16 sps:$4 sm:$0xff]   ;;  %v1966_v24 = vld [vmem:[%s3456_s2 + $0x240] ss:$16 sps:$4 sm:$0xff]   ;;  %v2014_v59 = vld [vmem:[%s3456_s2 + $0x48] ss:$16 sps:$4 sm:$0xff]  }
   0xd   :  { %971 = vmatprep.subr.bf16.mxu1 %v1951_v14  ;;  %v1967_v25 = vld [vmem:[%s3456_s2 + $0x24] ss:$16 sps:$4 sm:$0xff]   ;;  %v1971_v27 = vld [vmem:[%s3456_s2 + $0x20] ss:$16 sps:$4 sm:$0xff]   ;;  %v2023_v62 = vld [vmem:[%s3456_s2 + $0x2c] ss:$16 sps:$4 sm:$0xff]  }
   0xe   :  { %v1969_v26 = vld [vmem:[%s3456_s2 + $0x224] ss:$16 sps:$4 sm:$0xff]   ;;  %v1972_v28 = vld [vmem:[%s3456_s2 + $0x220] ss:$16 sps:$4 sm:$0xff]   ;;  %v2021_v0 = vld [vmem:[%s3456_s2 + $0x28] ss:$16 sps:$4 sm:$0xff]  }
   0xf   :  { %859 = vmatpush1.bf16.msra.mxu0 %v1953_v15  ;;  %v1973_v29 = vld [vmem:[%s3456_s2 + $0x4] ss:$16 sps:$4 sm:$0xff]   ;;  %v1977_v31 = vld [vmem:[%s3456_s2] ss:$16 sps:$4 sm:$0xff]   ;;  %v2029_v4 = vld [vmem:[%s3456_s2 + $0xc] ss:$16 sps:$4 sm:$0xff]  }
  0x10   :  { %972 = vmatpush1.bf16.msra.mxu1 %v1954_v16  ;;  %860 = vmatprep.subr.bf16.mxu0 %v1955_v17  ;;  %v1975_v30 = vld [vmem:[%s3456_s2 + $0x204] ss:$16 sps:$4 sm:$0xff]   ;;  %v1978_v32 = vld [vmem:[%s3456_s2 + $0x200] ss:$16 sps:$4 sm:$0xff]   ;;  %v2027_v5 = vld [vmem:[%s3456_s2 + $0x8] ss:$16 sps:$4 sm:$0xff]  }
  0x11   :  { %973 = vmatprep.subr.bf16.mxu1 %v1957_v18  ;;  %v1979_v33 = vld [vmem:[%s3456_s2 + $0x1e4] ss:$16 sps:$4 sm:$0xff]   ;;  %v1985_v37 = vld [vmem:[%s3456_s2 + $0x1e0] ss:$16 sps:$4 sm:$0xff]   ;;  %v2037_v7 = vld [vmem:[%s3456_s2 + $0x1ec] ss:$16 sps:$4 sm:$0xff]  }
  0x12   :  { %v2502_v35 = vld [vmem:[%s3457_s0 + $0x8] ss:$12 sps:$4 sm:$0xff]   ;;  %v1991_v41 = vld [vmem:[%s3456_s2 + $0x1c0] ss:$16 sps:$4 sm:$0xff]   ;;  %v2564_v53 = vld [vmem:[%s3457_s0 + $0x38] ss:$12 sps:$4 sm:$0xff]  }
  0x13   :  { %861 = vmatpush1.bf16.msra.mxu0 %v1959_v19  ;;  %v1986_v38 = vld [vmem:[%s3456_s2 + $0x1c4] ss:$16 sps:$4 sm:$0xff]   ;;  %v2533_v44 = vld [vmem:[%s3457_s0 + $0x20] ss:$12 sps:$4 sm:$0xff]   ;;  %v2601_v63 = vld [vmem:[%s3457_s0 + $0x50] ss:$12 sps:$4 sm:$0xff]  }
  0x14   :  { %974 = vmatpush1.bf16.msra.mxu1 %v1960_v20  ;;  %862 = vmatprep.subr.bf16.mxu0 %v1961_v21  ;;  %v1992_v42 = vld [vmem:[%s3456_s2 + $0x1a4] ss:$16 sps:$4 sm:$0xff]   ;;  %v1998_v46 = vld [vmem:[%s3456_s2 + $0x1a0] ss:$16 sps:$4 sm:$0xff]   ;;  %v2628_v8 = vld [vmem:[%s3456_s2 + $0x2ec] ss:$16 sps:$4 sm:$0xff]  }
  0x15   :  { %975 = vmatprep.subr.bf16.mxu1 %v1963_v22  ;;  %v1999_v47 = vld [vmem:[%s3456_s2 + $0x184] ss:$16 sps:$4 sm:$0xff]   ;;  %v2004_v50 = vld [vmem:[%s3456_s2 + $0x180] ss:$16 sps:$4 sm:$0xff]   ;;  %v2035_v11 = vld [vmem:[%s3456_s2 + $0x1e8] ss:$16 sps:$4 sm:$0xff]  }
  0x16   :  { %v2005_v51 = vld [vmem:[%s3456_s2 + $0x164] ss:$16 sps:$4 sm:$0xff]   ;;  %v2011_v55 = vld [vmem:[%s3456_s2 + $0x160] ss:$16 sps:$4 sm:$0xff]   ;;  %v2647_v12 = vld [vmem:[%s3456_s2 + $0x2e8] ss:$16 sps:$4 sm:$0xff]  }
  0x17   :  { %863 = vmatpush1.bf16.msra.mxu0 %v1965_v23  ;;  %v2575_v56 = vld [vmem:[%s3457_s0 + $0x4] ss:$12 sps:$4 sm:$0xff]   ;;  %v2633_v9 = vld [vmem:[%s3457_s0] ss:$12 sps:$4 sm:$0xff]   ;;  %v2639_v10 = vld [vmem:[%s3457_s0 + $0x68] ss:$12 sps:$4 sm:$0xff]  }
  0x18   :  { %976 = vmatpush1.bf16.msra.mxu1 %v1966_v24  ;;  %864 = vmatprep.subr.bf16.mxu0 %v1967_v25  ;;  %v2012_v57 = vld [vmem:[%s3456_s2 + $0x144] ss:$16 sps:$4 sm:$0xff]   ;;  %v2017_v60 = vld [vmem:[%s3456_s2 + $0x140] ss:$16 sps:$4 sm:$0xff]   ;;  %v2043_v13 = vld [vmem:[%s3456_s2 + $0x1cc] ss:$16 sps:$4 sm:$0xff]  }
  0x19   :  { %977 = vmatprep.subr.bf16.mxu1 %v1969_v26  ;;  %884 = vmatprep.mubr.bf16.mxu0 %v2575_v56  ;;  %v2018_v61 = vld [vmem:[%s3456_s2 + $0x124] ss:$16 sps:$4 sm:$0xff]   ;;  %v2024_v2 = vld [vmem:[%s3456_s2 + $0x120] ss:$16 sps:$4 sm:$0xff]   ;;  %v2656_v14 = vld [vmem:[%s3457_s0 + $0x1c] ss:$12 sps:$4 sm:$0xff]  }
  0x1a   :  { %v2025_v3 = vld [vmem:[%s3456_s2 + $0x104] ss:$16 sps:$4 sm:$0xff]   ;;  %v2030_v6 = vld [vmem:[%s3456_s2 + $0x100] ss:$16 sps:$4 sm:$0xff]   ;;  %v2041_v15 = vld [vmem:[%s3456_s2 + $0x1c8] ss:$16 sps:$4 sm:$0xff]  }
  0x1b   :  { %865 = vmatpush1.bf16.msra.mxu0 %v1971_v27  ;;  %v2664_v16 = vld [vmem:[%s3456_s2 + $0x2cc] ss:$16 sps:$4 sm:$0xff]   ;;  %v2675_v18 = vld [vmem:[%s3456_s2 + $0x2c8] ss:$16 sps:$4 sm:$0xff]   ;;  %v2702_v23 = vld [vmem:[%s3457_s0 + $0x34] ss:$12 sps:$4 sm:$0xff]  }
  0x1c   :  { %978 = vmatpush1.bf16.msra.mxu1 %v1972_v28  ;;  %866 = vmatprep.subr.bf16.mxu0 %v1973_v29  ;;  %v2050_v17 = vld [vmem:[%s3456_s2 + $0x1ac] ss:$16 sps:$4 sm:$0xff]   ;;  %v2687_v20 = vld [vmem:[%s3457_s0 + $0x18] ss:$12 sps:$4 sm:$0xff]  }
  0x1d   :  { %979 = vmatprep.subr.bf16.mxu1 %v1975_v30  ;;  %v2681_v19 = vld [vmem:[%s3456_s2 + $0x2ac] ss:$16 sps:$4 sm:$0xff]   ;;  %v2048_v22 = vld [vmem:[%s3456_s2 + $0x1a8] ss:$16 sps:$4 sm:$0xff]  }
  0x1e   :  { %v2693_v21 = vld [vmem:[%s3457_s0 + $0x80] ss:$12 sps:$4 sm:$0xff]   ;;  %v2711_v25 = vld [vmem:[%s3456_s2 + $0x2a8] ss:$16 sps:$4 sm:$0xff]   ;;  %v2731_v29 = vld [vmem:[%s3457_s0 + $0x30] ss:$12 sps:$4 sm:$0xff]  }
  0x1f   :  { %867 = vmatpush1.bf16.msra.mxu0 %v1977_v31  ;;  %v2056_v24 = vld [vmem:[%s3456_s2 + $0x18c] ss:$16 sps:$4 sm:$0xff]   ;;  %v2054_v27 = vld [vmem:[%s3456_s2 + $0x188] ss:$16 sps:$4 sm:$0xff]  }
  0x20   :  { %980 = vmatpush1.bf16.msra.mxu1 %v1978_v32  ;;  %868 = vmatprep.subr.bf16.mxu0 %v1979_v33  ;;  %v2718_v26 = vld [vmem:[%s3456_s2 + $0x28c] ss:$16 sps:$4 sm:$0xff]   ;;  %v2737_v30 = vld [vmem:[%s3456_s2 + $0x288] ss:$16 sps:$4 sm:$0xff]  }
  0x21   :  { %1078 = vmatprep.subr.bf16.mxu1 %v1984_v34  ;;  %v2063_v28 = vld [vmem:[%s3456_s2 + $0x16c] ss:$16 sps:$4 sm:$0xff]   ;;  %v2742_v31 = vld [vmem:[%s3457_s0 + $0x98] ss:$12 sps:$4 sm:$0xff]  }
  0x22   :  { %v2061_v32 = vld [vmem:[%s3456_s2 + $0x168] ss:$16 sps:$4 sm:$0xff]   ;;  %v2069_v34 = vld [vmem:[%s3456_s2 + $0x14c] ss:$16 sps:$4 sm:$0xff]  }
  0x23   :  { %998 = vmatmul.mubr.bf16.vlgmr.msra.gmra.mxu1 %v2502_v35  ;;  %869 = vmatpush2.bf16.msra.mxu0 %v1985_v37  ;;  %v2751_v33 = vld [vmem:[%s3457_s0 + $0x4c] ss:$12 sps:$4 sm:$0xff]  }
  0x24   :  { %1079 = vmatpush1.bf16.msra.mxu1 %v1982_v36  ;;  %870 = vmatprep.subr.bf16.mxu0 %v1986_v38  ;;  %v2760_v36 = vld [vmem:[%s3456_s2 + $0x26c] ss:$16 sps:$4 sm:$0xff]   ;;  %v2767_v37 = vld [vmem:[%s3456_s2 + $0x268] ss:$16 sps:$4 sm:$0xff]   ;;  %v148_v38 = vld [vmem:[%s3458_s1] sm:$0xff] }
  0x25   :  { %1080 = vmatprep.subr.bf16.mxu1 %v1990_v39  ;;  %1007 = vmatprep.mubr.bf16.mxu1 %v2363_v1  ;;  %v2067_v39 = vld [vmem:[%s3456_s2 + $0x148] ss:$16 sps:$4 sm:$0xff]  }
  0x26   :  { %166 = vperm.xlu0 %1929, %v148_v38  }
  0x27   :  { %871 = vmatpush2.bf16.msra.mxu0 %v1991_v41  ;;  %v150_v41 = vld [vmem:[%s3458_s1 + $0x10] sm:$0xff] }
  0x28   :  { %1081 = vmatpush1.bf16.msra.mxu1 %v1988_v40  ;;  %872 = vmatprep.subr.bf16.mxu0 %v1992_v42  ;;  %v2779_v40 = vld [vmem:[%s3456_s2 + $0x24c] ss:$16 sps:$4 sm:$0xff]  }
  0x29   :  { %1082 = vmatprep.subr.bf16.mxu1 %v1997_v43  ;;  %v2076_v42 = vld [vmem:[%s3456_s2 + $0x12c] ss:$16 sps:$4 sm:$0xff]   ;;  %v2792_v43 = vld [vmem:[%s3457_s0 + $0x48] ss:$12 sps:$4 sm:$0xff]   ;;  %176 = vperm.xlu1 %1930, %v150_v41  }
  0x2b   :  { %1008 = vmatmul.mubr.bf16.gmra.mxu1 %v2533_v44  ;;  %873 = vmatpush2.bf16.msra.mxu0 %v1998_v46  ;;  %v149_v46 = vld [vmem:[%s3458_s1 + $0x8] sm:$0xff] }
  0x2c   :  { %1083 = vmatpush1.bf16.msra.mxu1 %v1995_v45  ;;  %874 = vmatprep.subr.bf16.mxu0 %v1999_v47  ;;  %v2797_v45 = vld [vmem:[%s3457_s0 + $0xb0] ss:$12 sps:$4 sm:$0xff]   ;;  %v2074_v47 = vld [vmem:[%s3456_s2 + $0x128] ss:$16 sps:$4 sm:$0xff]  }
  0x2d   :  { %1084 = vmatprep.subr.bf16.mxu1 %v2003_v48  ;;  %1017 = vmatprep.mubr.bf16.mxu1 %v2363_v1  ;;  %v2809_v48 = vld [vmem:[%s3457_s0 + $0x64] ss:$12 sps:$4 sm:$0xff]  }
  0x2e   :  { %171 = vperm.xlu0 %1929, %v149_v46  }
  0x2f   :  { %875 = vmatpush2.bf16.msra.mxu0 %v2004_v50  ;;  %v2818_v50 = vld [vmem:[%s3456_s2 + $0x248] ss:$16 sps:$4 sm:$0xff]  }
  0x30   :  { %1085 = vmatpush1.bf16.msra.mxu1 %v2001_v49  ;;  %876 = vmatprep.subr.bf16.mxu0 %v2005_v51  ;;  %v2082_v49 = vld [vmem:[%s3456_s2 + $0x10c] ss:$16 sps:$4 sm:$0xff]  }
  0x31   :  { %1086 = vmatprep.subr.bf16.mxu1 %v2010_v52  ;;  %v2825_v51 = vld [vmem:[%s3456_s2 + $0x22c] ss:$16 sps:$4 sm:$0xff]  }
  0x32   :  { %v151_v52 = vld [vmem:[%s3458_s1 + $0x18] sm:$0xff] }
  0x33   :  { %1018 = vmatmul.mubr.bf16.gmra.mxu1 %v2564_v53  ;;  %877 = vmatpush2.bf16.msra.mxu0 %v2011_v55  ;;  %v152_v55 = vld [vmem:[%s3458_s1 + $0x20] sm:$0xff] }
  0x34   :  { %1087 = vmatpush1.bf16.msra.mxu1 %v2008_v54  ;;  %878 = vmatprep.subr.bf16.mxu0 %v2012_v57  ;;  %v2080_v54 = vld [vmem:[%s3456_s2 + $0x108] ss:$16 sps:$4 sm:$0xff]  }
  0x35   :  { %1088 = vmatprep.subr.bf16.mxu1 %v2016_v58  ;;  %1027 = vmatprep.mubr.bf16.mxu1 %v2363_v1  ;;  %v2842_v57 = vld [vmem:[%s3456_s2 + $0x228] ss:$16 sps:$4 sm:$0xff]   ;;  %v2847_v58 = vld [vmem:[%s3457_s0 + $0x60] ss:$12 sps:$4 sm:$0xff]  }
  0x36   :  { %181 = vperm.xlu1 %1930, %v151_v52   ;;  %186 = vperm.xlu0 %1929, %v152_v55  }
  0x37   :  { %879 = vmatpush2.bf16.msra.mxu0 %v2017_v60  ;;  %v2106_v60 = vld [vmem:[%s3456_s2 + $0x20c] ss:$16 sps:$4 sm:$0xff]  }
  0x38   :  { %1089 = vmatpush1.bf16.msra.mxu1 %v2014_v59  ;;  %880 = vmatprep.subr.bf16.mxu0 %v2018_v61  ;;  %v2856_v59 = vld [vmem:[%s3457_s0 + $0x7c] ss:$12 sps:$4 sm:$0xff]  }
  0x39   :  { %1090 = vmatprep.subr.bf16.mxu1 %v2023_v62  ;;  %v2104_v61 = vld [vmem:[%s3456_s2 + $0x208] ss:$16 sps:$4 sm:$0xff]   ;;  %v154_v62 = vld [vmem:[%s3458_s1 + $0x30] sm:$0xff] }
  0x3a   :  { %196 = vperm.xlu0 %1929, %v154_v62  }
  0x3b   :  { %1028 = vmatmul.mubr.bf16.gmra.mxu1 %v2601_v63  ;;  %881 = vmatpush2.bf16.msra.mxu0 %v2024_v2  ;;  %v2091_v2 = vld [vmem:[%s3457_s0 + $0x78] ss:$12 sps:$4 sm:$0xff]  }
  0x3c   :  { %1091 = vmatpush1.bf16.msra.mxu1 %v2021_v0  ;;  %882 = vmatprep.subr.bf16.mxu0 %v2025_v3  ;;  %v155_v0 = vld [vmem:[%s3458_s1 + $0x38] sm:$0xff]  ;;  %v156_v3 = vld [vmem:[%s3458_s1 + $0x40] sm:$0xff] }
  0x3d   :  { %1092 = vmatprep.subr.bf16.mxu1 %v2029_v4  ;;  %1037 = vmatprep.mubr.bf16.mxu1 %v2363_v1  ;;  %v2095_v4 = vld [vmem:[%s3457_s0 + $0x94] ss:$12 sps:$4 sm:$0xff]  }
  0x3e   :  { %206 = vperm.xlu0 %1929, %v156_v3  }
  0x3f   :  { %883 = vmatpush2.bf16.msra.mxu0 %v2030_v6  ;;  %v158_v6 = vld [vmem:[%s3458_s1 + $0x50] sm:$0xff] }
  0x40   :  { %1093 = vmatpush1.bf16.msra.mxu1 %v2027_v5  ;;  %1191 = vmatprep.subr.bf16.mxu0 %v2628_v8  ;;  %v157_v5 = vld [vmem:[%s3458_s1 + $0x48] sm:$0xff] }
  0x41   :  { %1094 = vmatprep.subr.bf16.mxu1 %v2037_v7  ;;  %v159_v7 = vld [vmem:[%s3458_s1 + $0x58] sm:$0xff] }
  0x42   :  { %885 = vmatmul.mubr.bf16.vlgmr.msra.gmra.mxu0 %v2633_v9  ;;  %216 = vperm.xlu0 %1929, %v158_v6  }
  0x43   :  { %1038 = vmatmul.mubr.bf16.gmra.mxu1 %v2639_v10  ;;  %1192 = vmatpush1.bf16.msra.mxu0 %v2647_v12 }
  0x44   :  { %1095 = vmatpush2.bf16.msra.mxu1 %v2035_v11  ;;  %894 = vmatprep.mubr.bf16.mxu0 %v2656_v14  ;;  %v2101_v11 = vld [vmem:[%s3457_s0 + $0xac] ss:$12 sps:$4 sm:$0xff]  }
  0x45   :  { %1096 = vmatprep.subr.bf16.mxu1 %v2043_v13  ;;  %1047 = vmatprep.mubr.bf16.mxu1 %v2363_v1  ;;  %v162_v13 = vld [vmem:[%s3458_s1 + $0x70] sm:$0xff] }
  0x46   :  { %1193 = vmatprep.subr.bf16.mxu0 %v2664_v16 }
  0x47   :  { %1194 = vmatpush1.bf16.msra.mxu0 %v2675_v18 }
  0x48   :  { %1097 = vmatpush2.bf16.msra.mxu1 %v2041_v15  ;;  %1195 = vmatprep.subr.bf16.mxu0 %v2681_v19  ;;  %v2103_v15 = vld [vmem:[%s3457_s0 + $0xa8] ss:$12 sps:$4 sm:$0xff]  }
  0x49   :  { %1098 = vmatprep.subr.bf16.mxu1 %v2050_v17 }
  0x4a   :  { %895 = vmatmul.mubr.bf16.gmra.mxu0 %v2687_v20 }
  0x4b   :  { %1048 = vmatmul.mubr.bf16.gmra.mxu1 %v2693_v21  ;;  %904 = vmatprep.mubr.bf16.mxu0 %v2702_v23 }
  0x4c   :  { %1099 = vmatpush2.bf16.msra.mxu1 %v2048_v22  ;;  %1057 = vmatprep.mubr.bf16.mxu1 %v2363_v1 }
  0x4d   :  { %1100 = vmatprep.subr.bf16.mxu1 %v2056_v24  ;;  %1196 = vmatpush1.bf16.msra.mxu0 %v2711_v25 }
  0x4e   :  { %1197 = vmatprep.subr.bf16.mxu0 %v2718_v26 }
  0x50   :  { %1101 = vmatpush2.bf16.msra.mxu1 %v2054_v27 }
  0x51   :  { %1102 = vmatprep.subr.bf16.mxu1 %v2063_v28  ;;  %1198 = vmatpush1.bf16.msra.mxu0 %v2737_v30 }
  0x52   :  { %905 = vmatmul.mubr.bf16.gmra.mxu0 %v2731_v29  ;;  %1199 = vmatprep.subr.bf16.mxu0 %v2760_v36 }
  0x53   :  { %1058 = vmatmul.mubr.bf16.gmra.mxu1 %v2742_v31  ;;  %914 = vmatprep.mubr.bf16.mxu0 %v2751_v33 }
  0x54   :  { %1103 = vmatpush2.bf16.msra.mxu1 %v2061_v32  ;;  %1067 = vmatprep.mubr.bf16.mxu1 %v2363_v1 }
  0x55   :  { %1104 = vmatprep.subr.bf16.mxu1 %v2069_v34  ;;  %1200 = vmatpush1.bf16.msra.mxu0 %v2767_v37 }
  0x56   :  { %1201 = vmatprep.subr.bf16.mxu0 %v2779_v40 }
  0x58   :  { %1105 = vmatpush2.bf16.msra.mxu1 %v2067_v39 }
  0x59   :  { %1106 = vmatprep.subr.bf16.mxu1 %v2076_v42  ;;  %1202 = vmatpush1.bf16.msra.mxu0 %v2818_v50 }
  0x5a   :  { %915 = vmatmul.mubr.bf16.gmra.mxu0 %v2792_v43  ;;  %1203 = vmatprep.subr.bf16.mxu0 %v2825_v51 }
  0x5b   :  { %1068 = vmatmul.mubr.bf16.gmra.mxu1 %v2797_v45  ;;  %924 = vmatprep.mubr.bf16.mxu0 %v2809_v48 }
  0x5c   :  { %1107 = vmatpush2.bf16.msra.mxu1 %v2074_v47  ;;  %1110 = vmatprep.mubr.bf16.mxu1 %v2575_v56  ;;  %v153_v56 = vld [vmem:[%s3458_s1 + $0x28] sm:$0xff] }
  0x5d   :  { %1108 = vmatprep.subr.bf16.mxu1 %v2082_v49  ;;  %1204 = vmatpush1.bf16.msra.mxu0 %v2842_v57 }
  0x5e   :  { %191 = vperm.xlu1 %1930, %v153_v56   ;;  %1205 = vmatprep.subr.bf16.mxu0 %v2106_v60 }
  0x60   :  { %1109 = vmatpush2.bf16.msra.mxu1 %v2080_v54 }
  0x61   :  { %1912 = vmatprep.subr.bf16.mxu1 %v2628_v8  ;;  %1206 = vmatpush1.bf16.msra.mxu0 %v2104_v61  ;;  %v2097_v8 = vld [vmem:[%s3457_s0 + $0x90] ss:$12 sps:$4 sm:$0xff]  }
  0x62   :  { %925 = vmatmul.mubr.bf16.gmra.mxu0 %v2847_v58  ;;  %201 = vperm.xlu1 %1930, %v155_v0  }
  0x63   :  { %1111 = vmatmul.mubr.bf16.vlgmr.msra.gmra.mxu1 %v2633_v9  ;;  %934 = vmatprep.mubr.bf16.mxu0 %v2856_v59  ;;  %v160_v9 = vld [vmem:[%s3458_s1 + $0x60] sm:$0xff] }
  0x64   :  { %1920 = vmatpush1.bf16.msra.mxu1 %v2647_v12  ;;  %1120 = vmatprep.mubr.bf16.mxu1 %v2656_v14  ;;  %v161_v12 = vld [vmem:[%s3458_s1 + $0x68] sm:$0xff]  ;;  %v163_v14 = vld [vmem:[%s3458_s1 + $0x78] sm:$0xff] }
  0x65   :  { %1913 = vmatprep.subr.bf16.mxu1 %v2664_v16  ;;  %226 = vperm.xlu0 %1929, %v160_v9  }
  0x66   :  { %211 = vperm.xlu1 %1930, %v157_v5  }
  0x68   :  { %1921 = vmatpush1.bf16.msra.mxu1 %v2675_v18 }
  0x69   :  { %1914 = vmatprep.subr.bf16.mxu1 %v2681_v19  ;;  %236 = vperm.xlu0 %1929, %v162_v13  }
  0x6a   :  { %935 = vmatmul.mubr.bf16.gmra.mxu0 %v2091_v2  ;;  %221 = vperm.xlu1 %1930, %v159_v7  }
  0x6b   :  { %1121 = vmatmul.mubr.bf16.gmra.mxu1 %v2687_v20  ;;  %944 = vmatprep.mubr.bf16.mxu0 %v2095_v4 }
  0x6c   :  { %1130 = vmatprep.mubr.bf16.mxu1 %v2702_v23  ;;  %1922 = vmatpush1.bf16.msra.mxu1 %v2711_v25 }
  0x6d   :  { %1915 = vmatprep.subr.bf16.mxu1 %v2718_v26 }
  0x6e   :  { %231 = vperm.xlu1 %1930, %v161_v12  }
  0x70   :  { %1923 = vmatpush1.bf16.msra.mxu1 %v2737_v30 }
  0x71   :  { %1916 = vmatprep.subr.bf16.mxu1 %v2760_v36 }
  0x72   :  { %945 = vmatmul.mubr.bf16.gmra.mxu0 %v2097_v8  ;;  %241 = vperm.xlu1 %1930, %v163_v14  }
  0x73   :  { %1131 = vmatmul.mubr.bf16.gmra.mxu1 %v2731_v29  ;;  %954 = vmatprep.mubr.bf16.mxu0 %v2101_v11 }
  0x74   :  { %1140 = vmatprep.mubr.bf16.mxu1 %v2751_v33  ;;  %1924 = vmatpush1.bf16.msra.mxu1 %v2767_v37 }
  0x75   :  { %1917 = vmatprep.subr.bf16.mxu1 %v2779_v40 }
  0x78   :  { %1925 = vmatpush1.bf16.msra.mxu1 %v2818_v50 }
  0x79   :  { %1918 = vmatprep.subr.bf16.mxu1 %v2825_v51 }
  0x7a   :  { %955 = vmatmul.mubr.bf16.gmra.mxu0 %v2103_v15 }
  0x7b   :  { %1141 = vmatmul.mubr.bf16.gmra.mxu1 %v2792_v43  ;;  %1223 = vmatprep.mubr.bf16.mxu0 %v2363_v1 }
  0x7c   :  { %1150 = vmatprep.mubr.bf16.mxu1 %v2809_v48  ;;  %1926 = vmatpush1.bf16.msra.mxu1 %v2842_v57 }
  0x7d   :  { %1919 = vmatprep.subr.bf16.mxu1 %v2106_v60 }
  0x80   :  { %1927 = vmatpush1.bf16.msra.mxu1 %v2104_v61 }
  0x82   :  { %1224 = vmatmul.mubr.bf16.vlgmr.msra.gmra.mxu0 %v2502_v35 }
  0x83   :  { %1151 = vmatmul.mubr.bf16.gmra.mxu1 %v2847_v58  ;;  %1233 = vmatprep.mubr.bf16.mxu0 %v2363_v1 }
  0x84   :  { %1160 = vmatprep.mubr.bf16.mxu1 %v2856_v59 }
  0x8a   :  { %1234 = vmatmul.mubr.bf16.gmra.mxu0 %v2533_v44 }
  0x8b   :  { %1161 = vmatmul.mubr.bf16.gmra.mxu1 %v2091_v2  ;;  %1243 = vmatprep.mubr.bf16.mxu0 %v2363_v1 }
  0x8c   :  { %1170 = vmatprep.mubr.bf16.mxu1 %v2095_v4 }
  0x92   :  { %1244 = vmatmul.mubr.bf16.gmra.mxu0 %v2564_v53 }
  0x93   :  { %1171 = vmatmul.mubr.bf16.gmra.mxu1 %v2097_v8  ;;  %1253 = vmatprep.mubr.bf16.mxu0 %v2363_v1 }
  0x94   :  { %1180 = vmatprep.mubr.bf16.mxu1 %v2101_v11 }
  0x9a   :  { %1254 = vmatmul.mubr.bf16.gmra.mxu0 %v2601_v63 }
  0x9b   :  { %1181 = vmatmul.mubr.bf16.gmra.mxu1 %v2103_v15  ;;  %1263 = vmatprep.mubr.bf16.mxu0 %v2363_v1 }
  0x9c   :  { %1283 = vmatprep.mubr.bf16.mxu1 %v2363_v1 }
  0xa1   :  { %v2964_v24 = vpop.permute.xlu0 %166 }
  0xa2   :  { %1264 = vmatmul.mubr.bf16.gmra.mxu0 %v2639_v10 }
  0xa3   :  { %1284 = vmatmul.mubr.bf16.vlgmr.msra.gmra.mxu1 %v2742_v31  ;;  %1273 = vmatprep.mubr.bf16.mxu0 %v2363_v1 }
  0xa4   :  { %1293 = vmatprep.mubr.bf16.mxu1 %v2363_v1  ;;  %v2978_v36 = vpop.permute.xlu1 %176 }
  0xa9   :  { %v2973_v30 = vpop.permute.xlu0 %171 }
  0xaa   :  { %1274 = vmatmul.mubr.bf16.gmra.mxu0 %v2693_v21 }
  0xab   :  { %1294 = vmatmul.mubr.bf16.gmra.mxu1 %v2797_v45 }
  0xb1   :  { %v2989_v54 = vpop.permute.xlu1 %181  ;;  %v2997_v3 = vpop.permute.xlu0 %186 }
  0xe3   :  { %v999_v35 = vpop.f32.mrf.mxu1 }
  0xe5   :  { %v1001_v44 = vpop.f32.mrf.mxu1 }
  0xe7   :  { %v1003_v53 = vpop.f32.mrf.mxu1 }
  0xe9   :  { %v1005_v63 = vpop.f32.mrf.mxu1 }
  0xeb   :  { %v1009_v16 = vpop.f32.mrf.mxu1 }
  0xed   :  { %v1011_v17 = vpop.f32.mrf.mxu1 }
  0xef   :  { %v1013_v18 = vpop.f32.mrf.mxu1 }
  0xf1   :  { %v1015_v19 = vpop.f32.mrf.mxu1 }
  0xf3   :  { %v2952_v20 = vpop.f32.mrf.mxu1 }
  0xf5   :  { %v2954_v10 = vpop.f32.mrf.mxu1 }
  0xf7   :  { %v2956_v22 = vpop.f32.mrf.mxu1 }
  0xf9   :  { %v2958_v23 = vpop.f32.mrf.mxu1 }
  0xfb   :  { %v2960_v1 = vpop.f32.mrf.mxu1 }
  0xfd   :  { %v2962_v21 = vpop.f32.mrf.mxu1 }
  0xff   :  { %v2966_v25 = vpop.f32.mrf.mxu1 }
 0x101   :  { %v2968_v26 = vpop.f32.mrf.mxu1 }
 0x102   :  { %v886_v27 = vpop.f32.mrf.mxu0 }
 0x103   :  { %v2970_v28 = vpop.f32.mrf.mxu1  ;;  %v887_v29 = vadd.f32 %v886_v27, %v2964_v24 }
 0x104   :  { %v888_v31 = vpop.f32.mrf.mxu0 }
 0x105   :  { %v2975_v32 = vpop.f32.mrf.mxu1  ;;  %v1000_v33 = vadd.f32 %v999_v35, %v887_v29  ;;  %v889_v34 = vadd.f32 %v888_v31, %v2964_v24 }
 0x106   :  { %v890_v37 = vpop.f32.mrf.mxu0 }
 0x107   :  { %v2980_v38 = vpop.f32.mrf.mxu1  ;;  %v1864_v39 = vmul.f32 -1.442695, %v1000_v33  ;;  %v1002_v40 = vadd.f32 %v1001_v44, %v889_v34  ;;  %v891_v41 = vadd.f32 %v890_v37, %v2973_v30  ;;  %v3014_v33 = vpop.permute.xlu0 %196 }
 0x108   :  { %v892_v42 = vpop.f32.mrf.mxu0 }
 0x109   :  { %v2983_v43 = vpop.f32.mrf.mxu1  ;;  %2107 = vpow2.f32 %v1864_v39  ;;  %v1865_v45 = vmul.f32 -1.442695, %v1002_v40  ;;  %v1004_v46 = vadd.f32 %v1003_v53, %v891_v41  ;;  %v893_v47 = vadd.f32 %v892_v42, %v2973_v30 }
 0x10a   :  { %v896_v48 = vpop.f32.mrf.mxu0 }
 0x10b   :  { %v2986_v49 = vpop.f32.mrf.mxu1  ;;  %2109 = vpow2.f32 %v1865_v45  ;;  %v1868_v50 = vmul.f32 -1.442695, %v1004_v46  ;;  %v1006_v51 = vadd.f32 %v1005_v63, %v893_v47  ;;  %v897_v52 = vadd.f32 %v896_v48, %v2978_v36 }
 0x10c   :  { %v898_v55 = vpop.f32.mrf.mxu0 }
 0x10d   :  { %v2991_v57 = vpop.f32.mrf.mxu1  ;;  %2111 = vpow2.f32 %v1868_v50  ;;  %v1869_v58 = vmul.f32 -1.442695, %v1006_v51  ;;  %v1010_v56 = vadd.f32 %v1009_v16, %v897_v52  ;;  %v899_v59 = vadd.f32 %v898_v55, %v2978_v36  ;;  %v3009_v16 = vpop.permute.xlu1 %191 }
 0x10e   :  { %v900_v60 = vpop.f32.mrf.mxu0 }
 0x10f   :  { %v2994_v61 = vpop.f32.mrf.mxu1  ;;  %2113 = vpow2.f32 %v1869_v58  ;;  %v1872_v62 = vmul.f32 -1.442695, %v1010_v56  ;;  %v1012_v0 = vadd.f32 %v1011_v17, %v899_v59  ;;  %v901_v2 = vadd.f32 %v900_v60, %v2989_v54 }
 0x110   :  { %v902_v4 = vpop.f32.mrf.mxu0 }
 0x111   :  { %v2999_v5 = vpop.f32.mrf.mxu1  ;;  %2115 = vpow2.f32 %v1872_v62  ;;  %v1873_v6 = vmul.f32 -1.442695, %v1012_v0  ;;  %v1014_v7 = vadd.f32 %v1013_v18, %v901_v2  ;;  %v903_v8 = vadd.f32 %v902_v4, %v2989_v54  ;;  %v3025_v52 = vpop.permute.xlu1 %201 }
 0x112   :  { %v906_v9 = vpop.f32.mrf.mxu0 }
 0x113   :  { %v3002_v11 = vpop.f32.mrf.mxu1  ;;  %2117 = vpow2.f32 %v1873_v6  ;;  %v1876_v12 = vmul.f32 -1.442695, %v1014_v7  ;;  %v1016_v13 = vadd.f32 %v1015_v19, %v903_v8  ;;  %v907_v14 = vadd.f32 %v906_v9, %v2997_v3 }
 0x114   :  { %v908_v15 = vpop.f32.mrf.mxu0 }
 0x115   :  { %v3005_v35 = vpop.f32.mrf.mxu1  ;;  %2119 = vpow2.f32 %v1876_v12  ;;  %v1877_v44 = vmul.f32 -1.442695, %v1016_v13  ;;  %v1020_v53 = vadd.f32 %v2952_v20, %v907_v14  ;;  %v909_v63 = vadd.f32 %v908_v15, %v2997_v3 }
 0x116   :  { %v2108_v17 = vpop.eup %2107  ;;  %v910_v18 = vpop.f32.mrf.mxu0 }
 0x117   :  { %v3011_v27 = vpop.f32.mrf.mxu1  ;;  %v1448_v29 = vadd.f32 1.0, %v2108_v17  ;;  %2121 = vpow2.f32 %v1877_v44  ;;  %v1880_v19 = vmul.f32 -1.442695, %v1020_v53  ;;  %v1022_v31 = vadd.f32 %v2954_v10, %v909_v63  ;;  %v3039_v53 = vpop.permute.xlu0 %206 }
 0x118   :  { %v2110_v34 = vpop.eup %2109  ;;  %v911_v37 = vadd.f32 %v910_v18, %v3009_v16  ;;  %v912_v39 = vpop.f32.mrf.mxu0 }
 0x119   :  { %v3017_v20 = vpop.f32.mrf.mxu1  ;;  %v1449_v40 = vadd.f32 1.0, %v2110_v34  ;;  %v1881_v41 = vmul.f32 -1.442695, %v1022_v31  ;;  %v913_v42 = vadd.f32 %v912_v39, %v3009_v16  ;;  %2123 = vpow2.f32 %v1880_v19  ;;  %v3044_v34 = vpop.permute.xlu1 %211 }
 0x11a   :  { %v2112_v45 = vpop.eup %2111  ;;  %v1024_v46 = vadd.f32 %v2956_v22, %v911_v37  ;;  %v916_v47 = vpop.f32.mrf.mxu0  ;;  %2125 = vrcp.f32 %v1448_v29 }
 0x11b   :  { %v3021_v48 = vpop.f32.mrf.mxu1  ;;  %v1452_v10 = vadd.f32 1.0, %v2112_v45  ;;  %v1026_v50 = vadd.f32 %v2958_v23, %v913_v42  ;;  %v917_v51 = vadd.f32 %v916_v47, %v3014_v33  ;;  %2127 = vpow2.f32 %v1881_v41 }
 0x11c   :  { %v2114_v55 = vpop.eup %2113  ;;  %v1884_v58 = vmul.f32 -1.442695, %v1024_v46  ;;  %v918_v56 = vpop.f32.mrf.mxu0  ;;  %2129 = vrcp.f32 %v1449_v40 }
 0x11d   :  { %v3027_v59 = vpop.f32.mrf.mxu1  ;;  %v1453_v60 = vadd.f32 1.0, %v2114_v55  ;;  %v1885_v22 = vmul.f32 -1.442695, %v1026_v50  ;;  %v1030_v62 = vadd.f32 %v2960_v1, %v917_v51  ;;  %v919_v2 = vadd.f32 %v918_v56, %v3014_v33  ;;  %v3055_v55 = vpop.permute.xlu0 %216 }
 0x11e   :  { %v2116_v0 = vpop.eup %2115  ;;  %2131 = vpow2.f32 %v1884_v58  ;;  %v920_v23 = vpop.f32.mrf.mxu0  ;;  %3470 = vst [vmem:[#allocation2_spill] sm:$0xff] %v3055_v55 }
 0x11f   :  { %v3031_v4 = vpop.f32.mrf.mxu1  ;;  %2133 = vrcp.f32 %v1452_v10  ;;  %v1456_v6 = vadd.f32 1.0, %v2116_v0  ;;  %v1888_v7 = vmul.f32 -1.442695, %v1030_v62  ;;  %v921_v8 = vadd.f32 %v920_v23, %v3025_v52 }
 0x120   :  { %v2118_v9 = vpop.eup %2117  ;;  %2135 = vpow2.f32 %v1885_v22  ;;  %v1032_v12 = vadd.f32 %v2962_v21, %v919_v2  ;;  %v922_v13 = vpop.f32.mrf.mxu0 }
 0x121   :  { %v3035_v14 = vpop.f32.mrf.mxu1  ;;  %2137 = vrcp.f32 %v1453_v60  ;;  %v1457_v1 = vadd.f32 1.0, %v2118_v9  ;;  %v1034_v15 = vadd.f32 %v2966_v25, %v921_v8  ;;  %v923_v44 = vadd.f32 %v922_v13, %v3025_v52 }
 0x122   :  { %v2120_v63 = vpop.eup %2119  ;;  %2139 = vpow2.f32 %v1888_v7  ;;  %v1889_v17 = vmul.f32 -1.442695, %v1032_v12  ;;  %v926_v18 = vpop.f32.mrf.mxu0 }
 0x123   :  { %v3041_v29 = vpop.f32.mrf.mxu1  ;;  %2141 = vrcp.f32 %v1456_v6  ;;  %v1460_v19 = vadd.f32 1.0, %v2120_v63  ;;  %v1892_v21 = vmul.f32 -1.442695, %v1034_v15  ;;  %v1036_v31 = vadd.f32 %v2968_v26, %v923_v44  ;;  %v3069_v15 = vpop.permute.xlu1 %221 }
 0x124   :  { %v2122_v37 = vpop.eup %2121  ;;  %2143 = vpow2.f32 %v1889_v17  ;;  %v927_v25 = vadd.f32 %v926_v18, %v3039_v53  ;;  %v928_v39 = vpop.f32.mrf.mxu0  ;;  %3471 = vst [vmem:[#allocation3_spill] sm:$0xff] %v3069_v15 }
 0x125   :  { %v3047_v40 = vpop.f32.mrf.mxu1  ;;  %2145 = vrcp.f32 %v1457_v1  ;;  %v1461_v41 = vadd.f32 1.0, %v2122_v37  ;;  %v1893_v42 = vmul.f32 -1.442695, %v1036_v31  ;;  %v929_v45 = vadd.f32 %v928_v39, %v3039_v53 }
 0x126   :  { %2147 = vpow2.f32 %v1892_v21  ;;  %v1040_v46 = vadd.f32 %v2970_v28, %v927_v25  ;;  %v930_v47 = vpop.f32.mrf.mxu0  ;;  %v2124_v26 = vpop.eup %2123 }
 0x127   :  { %v3051_v10 = vpop.f32.mrf.mxu1  ;;  %2149 = vrcp.f32 %v1460_v19  ;;  %v1042_v50 = vadd.f32 %v2975_v32, %v929_v45  ;;  %v931_v51 = vadd.f32 %v930_v47, %v3044_v34  ;;  %v3057_v58 = vpop.eup %2125  ;;  %v1464_v56 = vadd.f32 1.0, %v2124_v26 }
 0x128   :  { %2151 = vpow2.f32 %v1893_v42  ;;  %v1896_v60 = vmul.f32 -1.442695, %v1040_v46  ;;  %v932_v22 = vpop.f32.mrf.mxu0  ;;  %v2128_v28 = vpop.eup %2127 }
 0x129   :  { %v3059_v62 = vpop.f32.mrf.mxu1  ;;  %2153 = vrcp.f32 %v1461_v41  ;;  %v1897_v0 = vmul.f32 -1.442695, %v1042_v50  ;;  %v1044_v2 = vadd.f32 %v2980_v38, %v931_v51  ;;  %v933_v23 = vadd.f32 %v932_v22, %v3044_v34  ;;  %v3063_v32 = vpop.eup %2129 }
 0x12a   :  { %2155 = vrcp.f32 %v1464_v56  ;;  %v1465_v6 = vadd.f32 1.0, %v2128_v28  ;;  %v936_v7 = vpop.f32.mrf.mxu0  ;;  %v3083_v47 = vpop.permute.xlu0 %226 }
 0x12b   :  { %v3065_v8 = vpop.f32.mrf.mxu1  ;;  %v2132_v9 = vpop.eup %2131  ;;  %2157 = vpow2.f32 %v1896_v60  ;;  %v1900_v12 = vmul.f32 -1.442695, %v1044_v2  ;;  %v1046_v13 = vadd.f32 %v2983_v43, %v933_v23  ;;  %v937_v1 = vadd.f32 %v936_v7, %v3055_v55 }
 0x12c   :  { %v3071_v44 = vpop.eup %2133  ;;  %2159 = vrcp.f32 %v1465_v6  ;;  %v1468_v38 = vadd.f32 1.0, %v2132_v9  ;;  %v938_v63 = vpop.f32.mrf.mxu0 }
 0x12d   :  { %v3073_v17 = vpop.f32.mrf.mxu1  ;;  %v2136_v18 = vpop.eup %2135  ;;  %2161 = vpow2.f32 %v1897_v0  ;;  %v1901_v19 = vmul.f32 -1.442695, %v1046_v13  ;;  %v1050_v21 = vadd.f32 %v2986_v49, %v937_v1  ;;  %v939_v31 = vadd.f32 %v938_v63, %v3055_v55 }
 0x12e   :  { %v3077_v37 = vpop.eup %2137  ;;  %2163 = vrcp.f32 %v1468_v38  ;;  %v1469_v43 = vadd.f32 1.0, %v2136_v18  ;;  %v940_v25 = vpop.f32.mrf.mxu0  ;;  %v1123_v55 = vadd.f32 %v3065_v8, %v2978_v36  ;;  %v1125_v8 = vadd.f32 %v3073_v17, %v2978_v36 }
 0x12f   :  { %v3079_v39 = vpop.f32.mrf.mxu1  ;;  %v2140_v41 = vpop.eup %2139  ;;  %2165 = vpow2.f32 %v1900_v12  ;;  %v1904_v42 = vmul.f32 -1.442695, %v1050_v21  ;;  %v1052_v45 = vadd.f32 %v2991_v57, %v939_v31  ;;  %v941_v46 = vadd.f32 %v940_v25, %v3069_v15 }
 0x130   :  { %v3085_v26 = vpop.eup %2141  ;;  %2167 = vrcp.f32 %v1469_v43  ;;  %v1472_v49 = vadd.f32 1.0, %v2140_v41  ;;  %v942_v50 = vpop.f32.mrf.mxu0 }
 0x131   :  { %v3087_v51 = vpop.f32.mrf.mxu1  ;;  %v2144_v56 = vpop.eup %2143  ;;  %2169 = vpow2.f32 %v1901_v19  ;;  %v1905_v60 = vmul.f32 -1.442695, %v1052_v45  ;;  %v1054_v22 = vadd.f32 %v2994_v61, %v941_v46  ;;  %v943_v28 = vadd.f32 %v942_v50, %v3069_v15 }
 0x132   :  { %v3091_v0 = vpop.eup %2145  ;;  %2171 = vrcp.f32 %v1472_v49  ;;  %v1473_v57 = vadd.f32 1.0, %v2144_v56  ;;  %v946_v2 = vpop.f32.mrf.mxu0 }
 0x133   :  { %v3093_v23 = vpop.f32.mrf.mxu1  ;;  %v2148_v6 = vpop.eup %2147  ;;  %2173 = vpow2.f32 %v1904_v42  ;;  %v1908_v7 = vmul.f32 -1.442695, %v1054_v22  ;;  %v1056_v9 = vadd.f32 %v2999_v5, %v943_v28  ;;  %v947_v12 = vadd.f32 %v946_v2, %v3083_v47 }
 0x134   :  { %v3097_v13 = vpop.permute.xlu1 %231  ;;  %v3099_v1 = vpop.eup %2149  ;;  %2175 = vrcp.f32 %v1473_v57  ;;  %v1476_v61 = vadd.f32 1.0, %v2148_v6 }
 0x135   :  { %v948_v38 = vpop.f32.mrf.mxu0  ;;  %v3101_v63 = vpop.f32.mrf.mxu1  ;;  %2177 = vpow2.f32 %v1905_v60  ;;  %v1909_v19 = vmul.f32 -1.442695, %v1056_v9  ;;  %v1060_v43 = vadd.f32 %v3002_v11, %v947_v12 }
 0x136   :  { %v2152_v18 = vpop.eup %2151  ;;  %v949_v21 = vadd.f32 %v948_v38, %v3083_v47  ;;  %2179 = vrcp.f32 %v1476_v61  ;;  %v3112_v46 = vpop.permute.xlu0 %236 }
 0x137   :  { %v3104_v31 = vpop.eup %2153  ;;  %v1477_v5 = vadd.f32 1.0, %v2152_v18  ;;  %v950_v25 = vpop.f32.mrf.mxu0  ;;  %2181 = vpow2.f32 %v1908_v7  ;;  %3472 = vst [vmem:[#allocation4_spill] sm:$0xff] %v3112_v46 }
 0x138   :  { %v3107_v41 = vpop.f32.mrf.mxu1  ;;  %v3109_v42 = vpop.eup %2155  ;;  %v951_v45 = vadd.f32 %v950_v25, %v3097_v13  ;;  %v1062_v50 = vadd.f32 %v3005_v35, %v949_v21 }
 0x139   :  { %v2158_v49 = vpop.eup %2157  ;;  %2183 = vrcp.f32 %v1477_v5  ;;  %v952_v56 = vpop.f32.mrf.mxu0 }
 0x13a   :  { %v3115_v60 = vpop.f32.mrf.mxu1  ;;  %v3117_v22 = vpop.eup %2159  ;;  %v1480_v11 = vadd.f32 1.0, %v2158_v49  ;;  %2185 = vpow2.f32 %v1909_v19  ;;  %v953_v28 = vadd.f32 %v952_v56, %v3097_v13  ;;  %v1064_v2 = vadd.f32 %v3011_v27, %v951_v45 }
 0x13b   :  { %v2162_v57 = vpop.eup %2161  ;;  %2187 = vtanh.f32 %v1060_v43  ;;  %v956_v6 = vpop.f32.mrf.mxu0 }
 0x13c   :  { %v3121_v7 = vpop.f32.mrf.mxu1  ;;  %v3123_v9 = vpop.eup %2163  ;;  %2189 = vrcp.f32 %v1480_v11  ;;  %v1481_v35 = vadd.f32 1.0, %v2162_v57  ;;  %v957_v12 = vadd.f32 %v956_v6, %v3112_v46  ;;  %v1066_v18 = vadd.f32 %v3017_v20, %v953_v28 }
 0x13d   :  { %v3126_v61 = vpop.permute.xlu1 %241  ;;  %v2166_v38 = vpop.eup %2165  ;;  %2191 = vtanh.f32 %v1062_v50 }
 0x13e   :  { %3473 = vst [vmem:[#allocation5_spill] sm:$0xff] %v3126_v61  ;;  %v958_v19 = vpop.f32.mrf.mxu0  ;;  %v3129_v21 = vpop.f32.mrf.mxu1  ;;  %2193 = vrcp.f32 %v1481_v35  ;;  %v1484_v27 = vadd.f32 1.0, %v2166_v38  ;;  %v1070_v45 = vadd.f32 %v3021_v48, %v957_v12 }
 0x13f   :  { %v3131_v5 = vpop.eup %2167  ;;  %v959_v43 = vadd.f32 %v958_v19, %v3112_v46  ;;  %2195 = vtanh.f32 %v1064_v2  ;;  %v1113_v19 = vadd.f32 %v3041_v29, %v2964_v24 }
 0x140   :  { %v2170_v25 = vpop.eup %2169  ;;  %v960_v49 = vpop.f32.mrf.mxu0  ;;  %2197 = vrcp.f32 %v1484_v27 }
 0x141   :  { %v3135_v56 = vpop.f32.mrf.mxu1  ;;  %v3137_v11 = vpop.eup %2171  ;;  %v1485_v20 = vadd.f32 1.0, %v2170_v25  ;;  %v961_v50 = vadd.f32 %v960_v49, %v3126_v61  ;;  %2199 = vtanh.f32 %v1066_v18  ;;  %v1072_v57 = vadd.f32 %v3027_v59, %v959_v43 }
 0x142   :  { %v2174_v28 = vpop.eup %2173  ;;  %v962_v6 = vpop.f32.mrf.mxu0  ;;  %v1115_v43 = vadd.f32 %v3047_v40, %v2964_v24  ;;  %v1117_v40 = vadd.f32 %v3051_v10, %v2973_v30 }
 0x143   :  { %v3141_v35 = vpop.f32.mrf.mxu1  ;;  %v3143_v38 = vpop.eup %2175  ;;  %2201 = vrcp.f32 %v1485_v20  ;;  %v1488_v48 = vadd.f32 1.0, %v2174_v28  ;;  %v963_v2 = vadd.f32 %v962_v6, %v3126_v61  ;;  %v1074_v27 = vadd.f32 %v3031_v4, %v961_v50  ;;  %v1608_v50 = vld [vmem:[%s3459_s3] sm:$0xff] }
 0x144   :  { %v2178_v12 = vpop.eup %2177  ;;  %2203 = vtanh.f32 %v1070_v45  ;;  %v1225_v18 = vpop.f32.mrf.mxu0  ;;  %v1624_v10 = vmul.f32 %v3109_v42, %v1608_v50 }
 0x145   :  { %v3149_v25 = vpop.f32.mrf.mxu1  ;;  %v3151_v59 = vpop.eup %2179  ;;  %2205 = vrcp.f32 %v1488_v48  ;;  %v1489_v49 = vadd.f32 1.0, %v2178_v12  ;;  %v1076_v28 = vadd.f32 %v3035_v14, %v963_v2  ;;  %v1226_v6 = vadd.f32 %v1225_v18, %v1113_v19  ;;  %v1609_v14 = vld [vmem:[%s3459_s3 + $0x8] sm:$0xff] }
 0x146   :  { %v2182_v20 = vpop.eup %2181  ;;  %2207 = vtanh.f32 %v1072_v57  ;;  %v1227_v29 = vpop.f32.mrf.mxu0  ;;  %v1119_v19 = vadd.f32 %v3059_v62, %v2973_v30  ;;  %v1625_v30 = vmul.f32 %v3117_v22, %v1609_v14  ;;  %v1612_v62 = vld [vmem:[%s3459_s3 + $0x20] sm:$0xff]  ;;  %v1613_v22 = vld [vmem:[%s3459_s3 + $0x28] sm:$0xff] }
 0x147   :  { %v3156_v61 = vpop.f32.mrf.mxu1  ;;  %v3158_v45 = vpop.eup %2183  ;;  %2209 = vrcp.f32 %v1489_v49  ;;  %v1492_v4 = vadd.f32 1.0, %v2182_v20  ;;  %v1228_v15 = vadd.f32 %v1227_v29, %v1115_v43  ;;  %v1866_v57 = vmul.f32 -1.442695, %v1226_v6 }
 0x148   :  { %v2186_v24 = vpop.eup %2185  ;;  %2211 = vtanh.f32 %v1074_v27  ;;  %v1229_v2 = vpop.f32.mrf.mxu0 }
 0x149   :  { %v3168_v48 = vpop.f32.mrf.mxu1  ;;  %v2188_v12 = vpop.eup %2187  ;;  %2213 = vrcp.f32 %v1492_v4  ;;  %v1493_v18 = vadd.f32 1.0, %v2186_v24  ;;  %v1867_v43 = vmul.f32 -1.442695, %v1228_v15  ;;  %v1230_v29 = vadd.f32 %v1229_v2, %v1117_v40 }
 0x14a   :  { %v3172_v49 = vpop.eup %2189  ;;  %v1640_v20 = vmul.f32 %v2188_v12, %v3057_v58  ;;  %2215 = vtanh.f32 %v1076_v28  ;;  %v1231_v6 = vpop.f32.mrf.mxu0 }
 0x14b   :  { %v3176_v27 = vpop.f32.mrf.mxu1  ;;  %v2192_v46 = vpop.eup %2191  ;;  %2217 = vrcp.f32 %v1493_v18  ;;  %v1232_v15 = vadd.f32 %v1231_v6, %v1119_v19  ;;  %v1870_v4 = vmul.f32 -1.442695, %v1230_v29  ;;  %v1127_v18 = vadd.f32 %v3079_v39, %v2989_v54 }
 0x14c   :  { %v3184_v42 = vpop.eup %2193  ;;  %v1656_v58 = vadd.f32 %v1640_v20, %v1624_v10  ;;  %v1641_v28 = vmul.f32 %v2192_v46, %v3063_v32  ;;  %2219 = vpow2.f32 %v1866_v57  ;;  %v1235_v24 = vpop.f32.mrf.mxu0  ;;  %v1628_v46 = vmul.f32 %v3123_v9, %v1612_v62 }
 0x14d   :  { %v3187_v50 = vpop.f32.mrf.mxu1  ;;  %v2196_v40 = vpop.eup %2195  ;;  %2221 = vpow2.f32 %v1867_v43  ;;  %v1871_v14 = vmul.f32 -1.442695, %v1232_v15  ;;  %v1236_v2 = vadd.f32 %v1235_v24, %v1123_v55  ;;  %v1616_v55 = vld [vmem:[%s3459_s3 + $0x40] sm:$0xff]  ;;  %v1629_v9 = vmul.f32 %v3131_v5, %v1613_v22  ;;  %v1617_v15 = vld [vmem:[%s3459_s3 + $0x48] sm:$0xff] }
 0x14e   :  { %v3194_v12 = vpop.eup %2197  ;;  %2223 = vtanh.f32 %v1656_v58  ;;  %1720 = vst [vmem:[%s3460_s5] sm:$0xff] %v1656_v58  ;;  %v1657_v32 = vadd.f32 %v1641_v28, %v1625_v30  ;;  %v1644_v57 = vmul.f32 %v2196_v40, %v3071_v44  ;;  %v1237_v17 = vpop.f32.mrf.mxu0  ;;  %v1129_v62 = vadd.f32 %v3087_v51, %v2989_v54  ;;  %v1620_v22 = vld [vmem:[%s3459_s3 + $0x60] sm:$0xff] }
 0x14f   :  { %v3201_v36 = vpop.f32.mrf.mxu1  ;;  %v2200_v19 = vpop.eup %2199  ;;  %2225 = vpow2.f32 %v1870_v4  ;;  %v1874_v43 = vmul.f32 -1.442695, %v1236_v2  ;;  %v1238_v10 = vadd.f32 %v1237_v17, %v1125_v8  ;;  %v1632_v5 = vmul.f32 %v3137_v11, %v1616_v55 }
 0x150   :  { %v3208_v20 = vpop.eup %2201  ;;  %2227 = vtanh.f32 %v1657_v32  ;;  %1721 = vst [vmem:[%s3460_s5 + $0x8] sm:$0xff] %v1657_v32  ;;  %v1660_v44 = vadd.f32 %v1644_v57, %v1628_v46  ;;  %v1645_v29 = vmul.f32 %v2200_v19, %v3077_v37  ;;  %v1239_v6 = vpop.f32.mrf.mxu0  ;;  %v1133_v8 = vadd.f32 %v3093_v23, %v2997_v3  ;;  %v1621_v23 = vld [vmem:[%s3459_s3 + $0x68] sm:$0xff] }
 0x151   :  { %v3215_v39 = vpop.f32.mrf.mxu1  ;;  %v2204_v30 = vpop.eup %2203  ;;  %2229 = vpow2.f32 %v1871_v14  ;;  %v1875_v58 = vmul.f32 -1.442695, %v1238_v10  ;;  %v1240_v28 = vadd.f32 %v1239_v6, %v1127_v18  ;;  %v1633_v11 = vmul.f32 %v3143_v38, %v1617_v15 }
 0x152   :  { %v3222_v4 = vpop.eup %2205  ;;  %2231 = vtanh.f32 %v1660_v44  ;;  %1724 = vst [vmem:[%s3460_s5 + $0x20] sm:$0xff] %v1660_v44  ;;  %v1661_v37 = vadd.f32 %v1645_v29, %v1629_v9  ;;  %v1648_v24 = vmul.f32 %v2204_v30, %v3085_v26  ;;  %v1241_v51 = vpop.f32.mrf.mxu0  ;;  %v1135_v18 = vadd.f32 %v3101_v63, %v2997_v3 }
 0x153   :  { %v3229_v54 = vpop.f32.mrf.mxu1  ;;  %v2208_v40 = vpop.eup %2207  ;;  %2233 = vpow2.f32 %v1874_v43  ;;  %v1878_v14 = vmul.f32 -1.442695, %v1240_v28  ;;  %v1242_v2 = vadd.f32 %v1241_v51, %v1129_v62  ;;  %v1636_v38 = vmul.f32 %v3151_v59, %v1620_v22 }
 0x154   :  { %v3236_v32 = vpop.eup %2209  ;;  %2235 = vtanh.f32 %v1661_v37  ;;  %1725 = vst [vmem:[%s3460_s5 + $0x28] sm:$0xff] %v1661_v37  ;;  %v1664_v26 = vadd.f32 %v1648_v24, %v1632_v5  ;;  %v1649_v46 = vmul.f32 %v2208_v40, %v3091_v0  ;;  %v1245_v17 = vpop.f32.mrf.mxu0  ;;  %v1137_v3 = vadd.f32 %v3107_v41, %v3009_v16 }
 0x155   :  { %v3246_v57 = vpop.f32.mrf.mxu1  ;;  %v2212_v19 = vpop.eup %2211  ;;  %2237 = vpow2.f32 %v1875_v58  ;;  %v1879_v55 = vmul.f32 -1.442695, %v1242_v2  ;;  %v1246_v43 = vadd.f32 %v1245_v17, %v1133_v8  ;;  %v1637_v63 = vmul.f32 %v3158_v45, %v1621_v23 }
 0x156   :  { %v3250_v10 = vpop.eup %2213  ;;  %2239 = vtanh.f32 %v1664_v26  ;;  %1728 = vst [vmem:[%s3460_s5 + $0x40] sm:$0xff] %v1664_v26  ;;  %v1665_v0 = vadd.f32 %v1649_v46, %v1633_v11  ;;  %v1652_v44 = vmul.f32 %v2212_v19, %v3099_v1  ;;  %v1247_v29 = vpop.f32.mrf.mxu0  ;;  %v1139_v41 = vadd.f32 %v3115_v60, %v3009_v16 }
 0x157   :  { %v3257_v9 = vpop.f32.mrf.mxu1  ;;  %v2216_v6 = vpop.eup %2215  ;;  %2241 = vpow2.f32 %v1878_v14  ;;  %v1882_v30 = vmul.f32 -1.442695, %v1246_v43  ;;  %v1248_v15 = vadd.f32 %v1247_v29, %v1135_v18  ;;  %v1143_v22 = vadd.f32 %v3121_v7, %v3014_v33 }
 0x158   :  { %v3262_v62 = vpop.eup %2217  ;;  %2243 = vtanh.f32 %v1665_v0  ;;  %1729 = vst [vmem:[%s3460_s5 + $0x48] sm:$0xff] %v1665_v0  ;;  %v1668_v59 = vadd.f32 %v1652_v44, %v1636_v38  ;;  %v1653_v1 = vmul.f32 %v2216_v6, %v3104_v31  ;;  %v1249_v28 = vpop.f32.mrf.mxu0  ;;  %v1145_v17 = vadd.f32 %v3129_v21, %v3014_v33 }
 0x159   :  { %v3268_v58 = vpop.f32.mrf.mxu1  ;;  %v2220_v37 = vpop.eup %2219  ;;  %2245 = vpow2.f32 %v1879_v55  ;;  %v1250_v51 = vadd.f32 %v1249_v28, %v1137_v3  ;;  %v1883_v2 = vmul.f32 -1.442695, %v1248_v15  ;;  %v1147_v44 = vadd.f32 %v3135_v56, %v3025_v52 }
 0x15a   :  { %v2222_v45 = vpop.eup %2221  ;;  %2247 = vtanh.f32 %v1668_v59  ;;  %1732 = vst [vmem:[%s3460_s5 + $0x60] sm:$0xff] %v1668_v59  ;;  %v1669_v5 = vadd.f32 %v1653_v1, %v1637_v63  ;;  %v1450_v24 = vadd.f32 1.0, %v2220_v37  ;;  %v1251_v31 = vpop.f32.mrf.mxu0  ;;  %v1149_v59 = vadd.f32 %v3141_v35, %v3025_v52 }
 0x15b   :  { %v3275_v40 = vpop.f32.mrf.mxu1  ;;  %v2224_v8 = vpop.eup %2223  ;;  %v1451_v14 = vadd.f32 1.0, %v2222_v45  ;;  %2249 = vpow2.f32 %v1882_v30  ;;  %v1252_v26 = vadd.f32 %v1251_v31, %v1139_v41  ;;  %v1886_v18 = vmul.f32 -1.442695, %v1250_v51 }
 0x15c   :  { %v2226_v16 = vpop.eup %2225  ;;  %v1688_v60 = vmul.f32 %v2224_v8, %v3172_v49  ;;  %2251 = vtanh.f32 %v1669_v5  ;;  %1733 = vst [vmem:[%s3460_s5 + $0x68] sm:$0xff] %v1669_v5  ;;  %v1255_v46 = vpop.f32.mrf.mxu0  ;;  %v1153_v5 = vadd.f32 %v3149_v25, %v3039_v53 }
 0x15d   :  { %v3283_v11 = vpop.f32.mrf.mxu1  ;;  %v2228_v23 = vpop.eup %2227  ;;  %2253 = vrcp.f32 %v1450_v24  ;;  %v1454_v7 = vadd.f32 1.0, %v2226_v16  ;;  %v1256_v55 = vadd.f32 %v1255_v46, %v1143_v22  ;;  %v1155_v22 = vadd.f32 %v3156_v61, %v3039_v53 }
 0x15e   :  { %v2230_v19 = vpop.eup %2229  ;;  %1704 = vst [vmem:[%s3461_s4] sm:$0xff] %v1688_v60  ;;  %v1689_v49 = vmul.f32 %v2228_v23, %v3184_v42  ;;  %2255 = vrcp.f32 %v1451_v14  ;;  %v1257_v0 = vpop.f32.mrf.mxu0  ;;  %v1887_v42 = vmul.f32 -1.442695, %v1252_v26  ;;  %v1173_v61 = vadd.f32 %v3246_v57, %v3083_v47 }
 0x15f   :  { %v3291_v43 = vpop.f32.mrf.mxu1  ;;  %v2232_v38 = vpop.eup %2231  ;;  %2257 = vrcp.f32 %v1454_v7  ;;  %v1455_v33 = vadd.f32 1.0, %v2230_v19  ;;  %v1258_v6 = vadd.f32 %v1257_v0, %v1145_v17 }
 0x160   :  { %v2234_v21 = vpop.eup %2233  ;;  %1705 = vst [vmem:[%s3461_s4 + $0x8] sm:$0xff] %v1689_v49  ;;  %v1692_v29 = vmul.f32 %v2232_v38, %v3194_v12  ;;  %2259 = vpow2.f32 %v1883_v2  ;;  %v1259_v63 = vpop.f32.mrf.mxu0  ;;  %v1890_v12 = vmul.f32 -1.442695, %v1256_v55 }
 0x161   :  { %v3299_v3 = vpop.f32.mrf.mxu1  ;;  %v2236_v30 = vpop.eup %2235  ;;  %2261 = vrcp.f32 %v1455_v33  ;;  %v1458_v56 = vadd.f32 1.0, %v2234_v21  ;;  %v1260_v28 = vadd.f32 %v1259_v63, %v1147_v44  ;;  %v1159_v63 = vadd.f32 %v3176_v27, %v3044_v34  ;;  %v3474_v27 = vld [vmem:[#allocation2_spill] sm:$0xff] }
 0x162   :  { %v2238_v1 = vpop.eup %2237  ;;  %1708 = vst [vmem:[%s3461_s4 + $0x20] sm:$0xff] %v1692_v29  ;;  %v1693_v15 = vmul.f32 %v2236_v30, %v3208_v20  ;;  %2263 = vpow2.f32 %v1886_v18  ;;  %v1261_v41 = vpop.f32.mrf.mxu0  ;;  %v1891_v20 = vmul.f32 -1.442695, %v1258_v6  ;;  %v1157_v18 = vadd.f32 %v3168_v48, %v3044_v34 }
 0x163   :  { %v3307_v37 = vpop.f32.mrf.mxu1  ;;  %v2240_v45 = vpop.eup %2239  ;;  %2265 = vrcp.f32 %v1458_v56  ;;  %v1459_v52 = vadd.f32 1.0, %v2238_v1  ;;  %v1262_v51 = vadd.f32 %v1261_v41, %v1149_v59  ;;  %v1175_v48 = vadd.f32 %v3257_v9, %v3083_v47 }
 0x164   :  { %v2242_v35 = vpop.eup %2241  ;;  %1709 = vst [vmem:[%s3461_s4 + $0x28] sm:$0xff] %v1693_v15  ;;  %v1696_v24 = vmul.f32 %v2240_v45, %v3222_v4  ;;  %2267 = vpow2.f32 %v1887_v42  ;;  %v1265_v31 = vpop.f32.mrf.mxu0  ;;  %v1894_v4 = vmul.f32 -1.442695, %v1260_v28  ;;  %v1177_v1 = vadd.f32 %v3268_v58, %v3097_v13 }
 0x165   :  { %v2244_v8 = vpop.eup %2243  ;;  %2269 = vrcp.f32 %v1459_v52  ;;  %v1462_v14 = vadd.f32 1.0, %v2242_v35  ;;  %v1266_v25 = vadd.f32 %v1265_v31, %v1153_v5  ;;  %v1285_v2 = vpop.f32.mrf.mxu1  ;;  %v1163_v5 = vadd.f32 %v3187_v50, %v3474_v27 }
 0x166   :  { %v2246_v16 = vpop.eup %2245  ;;  %1712 = vst [vmem:[%s3461_s4 + $0x40] sm:$0xff] %v1696_v24  ;;  %v1697_v60 = vmul.f32 %v2244_v8, %v3236_v32  ;;  %2271 = vpow2.f32 %v1890_v12  ;;  %v1267_v26 = vpop.f32.mrf.mxu0  ;;  %v1895_v32 = vmul.f32 -1.442695, %v1262_v51  ;;  %v1286_v57 = vadd.f32 %v1285_v2, %v1173_v61 }
 0x167   :  { %v2248_v46 = vpop.eup %2247  ;;  %2273 = vrcp.f32 %v1462_v14  ;;  %v1463_v23 = vadd.f32 1.0, %v2246_v16  ;;  %v1268_v17 = vadd.f32 %v1267_v26, %v1155_v22  ;;  %v1898_v0 = vmul.f32 -1.442695, %v1266_v25  ;;  %v1287_v44 = vpop.f32.mrf.mxu1 }
 0x168   :  { %v2250_v7 = vpop.eup %2249  ;;  %1713 = vst [vmem:[%s3461_s4 + $0x48] sm:$0xff] %v1697_v60  ;;  %v1700_v53 = vmul.f32 %v2248_v46, %v3250_v10  ;;  %2275 = vpow2.f32 %v1891_v20  ;;  %v1269_v19 = vpop.f32.mrf.mxu0  ;;  %v1288_v30 = vadd.f32 %v1287_v44, %v1175_v48  ;;  %v1179_v51 = vadd.f32 %v3275_v40, %v3097_v13  ;;  %v1610_v13 = vld [vmem:[%s3459_s3 + $0x10] sm:$0xff] }
 0x169   :  { %v2252_v49 = vpop.eup %2251  ;;  %2277 = vrcp.f32 %v1463_v23  ;;  %v1466_v55 = vadd.f32 1.0, %v2250_v7  ;;  %v1899_v21 = vmul.f32 -1.442695, %v1268_v17  ;;  %v1270_v29 = vadd.f32 %v1269_v19, %v1157_v18  ;;  %v1289_v47 = vpop.f32.mrf.mxu1  ;;  %v3475_v17 = vld [vmem:[#allocation4_spill] sm:$0xff] }
 0x16a   :  { %v3329_v38 = vpop.eup %2253  ;;  %1716 = vst [vmem:[%s3461_s4 + $0x60] sm:$0xff] %v1700_v53  ;;  %v1701_v10 = vmul.f32 %v2252_v49, %v3262_v62  ;;  %2279 = vpow2.f32 %v1894_v4  ;;  %v1271_v6 = vpop.f32.mrf.mxu0  ;;  %v1290_v52 = vadd.f32 %v1289_v47, %v1177_v1  ;;  %v1165_v26 = vadd.f32 %v3201_v36, %v3474_v27 }
 0x16b   :  { %v3335_v33 = vpop.eup %2255  ;;  %2281 = vrcp.f32 %v1466_v55  ;;  %v1902_v15 = vmul.f32 -1.442695, %v1270_v29  ;;  %v1272_v12 = vadd.f32 %v1271_v6, %v1159_v63  ;;  %v1291_v20 = vpop.f32.mrf.mxu1  ;;  %v1183_v7 = vadd.f32 %v3283_v11, %v3475_v17  ;;  %v1611_v11 = vld [vmem:[%s3459_s3 + $0x18] sm:$0xff] }
 0x16c   :  { %v3339_v42 = vpop.eup %2257  ;;  %1717 = vst [vmem:[%s3461_s4 + $0x68] sm:$0xff] %v1701_v10  ;;  %2283 = vpow2.f32 %v1895_v32  ;;  %v1275_v45 = vpop.f32.mrf.mxu0  ;;  %v1292_v50 = vadd.f32 %v1291_v20, %v1179_v51  ;;  %v3476_v32 = vld [vmem:[#allocation3_spill] sm:$0xff] }
 0x16d   :  { %v2260_v62 = vpop.eup %2259  ;;  %2285 = vpow2.f32 %v1898_v0  ;;  %v1903_v31 = vmul.f32 -1.442695, %v1272_v12  ;;  %v1276_v8 = vadd.f32 %v1275_v45, %v1163_v5  ;;  %v1295_v46 = vpop.f32.mrf.mxu1  ;;  %v1167_v19 = vadd.f32 %v3215_v39, %v3476_v32  ;;  %v1614_v12 = vld [vmem:[%s3459_s3 + $0x30] sm:$0xff] }
 0x16e   :  { %v3346_v59 = vpop.eup %2261  ;;  %v1467_v56 = vadd.f32 1.0, %v2260_v62  ;;  %2287 = vtanh.f32 %v1286_v57  ;;  %v1277_v16 = vpop.f32.mrf.mxu0  ;;  %v1296_v10 = vadd.f32 %v1295_v46, %v1183_v7  ;;  %v1185_v39 = vadd.f32 %v3291_v43, %v3475_v17 }
 0x16f   :  { %v2264_v9 = vpop.eup %2263  ;;  %2289 = vpow2.f32 %v1899_v21  ;;  %v1906_v40 = vmul.f32 -1.442695, %v1276_v8  ;;  %v1278_v49 = vadd.f32 %v1277_v16, %v1165_v26  ;;  %v1297_v48 = vpop.f32.mrf.mxu1  ;;  %v1169_v63 = vadd.f32 %v3229_v54, %v3476_v32  ;;  %v3477_v54 = vld [vmem:[#allocation5_spill] sm:$0xff] }
 0x170   :  { %v3350_v28 = vpop.eup %2265  ;;  %2291 = vrcp.f32 %v1467_v56  ;;  %v1470_v41 = vadd.f32 1.0, %v2264_v9  ;;  %v1279_v36 = vpop.f32.mrf.mxu0  ;;  %v1298_v43 = vadd.f32 %v1297_v48, %v1185_v39  ;;  %v1187_v27 = vadd.f32 %v3299_v3, %v3477_v54  ;;  %v1622_v39 = vld [vmem:[%s3459_s3 + $0x70] sm:$0xff] }
 0x171   :  { %v2268_v34 = vpop.eup %2267  ;;  %2293 = vtanh.f32 %v1288_v30  ;;  %v1280_v6 = vadd.f32 %v1279_v36, %v1167_v19  ;;  %v1907_v56 = vmul.f32 -1.442695, %v1278_v49  ;;  %v1299_v45 = vpop.f32.mrf.mxu1  ;;  %v1189_v16 = vadd.f32 %v3307_v37, %v3477_v54  ;;  %v1618_v37 = vld [vmem:[%s3459_s3 + $0x50] sm:$0xff] }
 0x172   :  { %v3354_v35 = vpop.eup %2269  ;;  %2295 = vrcp.f32 %v1470_v41  ;;  %v1471_v24 = vadd.f32 1.0, %v2268_v34  ;;  %v1281_v47 = vpop.f32.mrf.mxu0  ;;  %v1300_v8 = vadd.f32 %v1299_v45, %v1187_v27 }
 0x173   :  { %v2272_v58 = vpop.eup %2271  ;;  %2297 = vpow2.f32 %v1902_v15  ;;  %v1910_v5 = vmul.f32 -1.442695, %v1280_v6 }
 0x174   :  { %v3358_v22 = vpop.eup %2273  ;;  %2299 = vrcp.f32 %v1471_v24  ;;  %v1474_v14 = vadd.f32 1.0, %v2272_v58 }
 0x175   :  { %v2276_v25 = vpop.eup %2275  ;;  %2301 = vtanh.f32 %v1290_v52  ;;  %v1282_v52 = vadd.f32 %v1281_v47, %v1169_v63 }
 0x176   :  { %v3360_v60 = vpop.eup %2277  ;;  %2303 = vrcp.f32 %v1474_v14  ;;  %v1475_v4 = vadd.f32 1.0, %v2276_v25  ;;  %v1301_v25 = vpop.f32.mrf.mxu1 }
 0x177   :  { %v2280_v2 = vpop.eup %2279  ;;  %2305 = vpow2.f32 %v1903_v31 }
 0x178   :  { %v2282_v23 = vpop.eup %2281  ;;  %2307 = vrcp.f32 %v1475_v4  ;;  %v1478_v53 = vadd.f32 1.0, %v2280_v2  ;;  %v1911_v4 = vmul.f32 -1.442695, %v1282_v52 }
 0x179   :  { %v2284_v61 = vpop.eup %2283  ;;  %2309 = vtanh.f32 %v1292_v50  ;;  %v1626_v0 = vmul.f32 %v2282_v23, %v1610_v13  ;;  %v1302_v23 = vadd.f32 %v1301_v25, %v1189_v16 }
 0x17a   :  { %v2286_v18 = vpop.eup %2285  ;;  %2311 = vrcp.f32 %v1478_v53  ;;  %v1479_v55 = vadd.f32 1.0, %v2284_v61 }
 0x17b   :  { %v2288_v57 = vpop.eup %2287  ;;  %v1482_v44 = vadd.f32 1.0, %v2286_v18  ;;  %2313 = vpow2.f32 %v1906_v40 }
 0x17c   :  { %v2290_v21 = vpop.eup %2289  ;;  %2315 = vrcp.f32 %v1479_v55  ;;  %v1642_v29 = vmul.f32 %v2288_v57, %v3329_v38 }
 0x17d   :  { %v2292_v62 = vpop.eup %2291  ;;  %2317 = vrcp.f32 %v1482_v44  ;;  %v1483_v30 = vadd.f32 1.0, %v2290_v21 }
 0x17e   :  { %v2294_v9 = vpop.eup %2293  ;;  %v1658_v1 = vadd.f32 %v1642_v29, %v1626_v0  ;;  %v1627_v15 = vmul.f32 %v2292_v62, %v1611_v11  ;;  %2319 = vtanh.f32 %v1296_v10 }
 0x17f   :  { %v2296_v41 = vpop.eup %2295  ;;  %2321 = vrcp.f32 %v1483_v30  ;;  %v1643_v38 = vmul.f32 %v2294_v9, %v3335_v33  ;;  %v1615_v33 = vld [vmem:[%s3459_s3 + $0x38] sm:$0xff] }
 0x180   :  { %v2298_v34 = vpop.eup %2297  ;;  %2323 = vtanh.f32 %v1658_v1  ;;  %1722 = vst [vmem:[%s3460_s5 + $0x10] sm:$0xff] %v1658_v1  ;;  %v1630_v51 = vmul.f32 %v2296_v41, %v1614_v12  ;;  %v1623_v1 = vld [vmem:[%s3459_s3 + $0x78] sm:$0xff] }
 0x181   :  { %v2300_v24 = vpop.eup %2299  ;;  %v1659_v20 = vadd.f32 %v1643_v38, %v1627_v15  ;;  %v1486_v58 = vadd.f32 1.0, %v2298_v34  ;;  %2325 = vpow2.f32 %v1907_v56 }
 0x182   :  { %v2302_v31 = vpop.eup %2301  ;;  %2327 = vtanh.f32 %v1298_v43  ;;  %v1631_v40 = vmul.f32 %v2300_v24, %v1615_v33 }
 0x183   :  { %v2304_v3 = vpop.eup %2303  ;;  %2329 = vtanh.f32 %v1659_v20  ;;  %1723 = vst [vmem:[%s3460_s5 + $0x18] sm:$0xff] %v1659_v20  ;;  %v1646_v14 = vmul.f32 %v2302_v31, %v3339_v42 }
 0x184   :  { %v2306_v50 = vpop.eup %2305  ;;  %2331 = vrcp.f32 %v1486_v58  ;;  %v1634_v19 = vmul.f32 %v2304_v3, %v1618_v37 }
 0x185   :  { %v2308_v2 = vpop.eup %2307  ;;  %v1662_v26 = vadd.f32 %v1646_v14, %v1630_v51  ;;  %v1487_v13 = vadd.f32 1.0, %v2306_v50  ;;  %2333 = vpow2.f32 %v1910_v5 }
 0x186   :  { %v2310_v46 = vpop.eup %2309  ;;  %2335 = vtanh.f32 %v1300_v8 }
 0x187   :  { %v2312_v17 = vpop.eup %2311  ;;  %2337 = vtanh.f32 %v1662_v26  ;;  %1726 = vst [vmem:[%s3460_s5 + $0x30] sm:$0xff] %v1662_v26  ;;  %v1647_v42 = vmul.f32 %v2310_v46, %v3346_v59  ;;  %v1619_v59 = vld [vmem:[%s3459_s3 + $0x58] sm:$0xff] }
 0x188   :  { %v2314_v7 = vpop.eup %2313  ;;  %2339 = vrcp.f32 %v1487_v13  ;;  %v1635_v11 = vmul.f32 %v2308_v2, %v1619_v59  ;;  %v1638_v56 = vmul.f32 %v2312_v17, %v1622_v39 }
 0x189   :  { %v2316_v53 = vpop.eup %2315  ;;  %v1663_v61 = vadd.f32 %v1647_v42, %v1631_v40  ;;  %2341 = vpow2.f32 %v1911_v4  ;;  %v1490_v36 = vadd.f32 1.0, %v2314_v7 }
 0x18a   :  { %v2318_v32 = vpop.eup %2317  ;;  %2343 = vtanh.f32 %v1302_v23  ;;  %v1639_v45 = vmul.f32 %v2316_v53, %v1623_v1 }
 0x18b   :  { %v2320_v49 = vpop.eup %2319  ;;  %2345 = vtanh.f32 %v1663_v61  ;;  %1727 = vst [vmem:[%s3460_s5 + $0x38] sm:$0xff] %v1663_v61 }
 0x18c   :  { %v2322_v18 = vpop.eup %2321  ;;  %v1650_v55 = vmul.f32 %v2320_v49, %v3350_v28  ;;  %2347 = vrcp.f32 %v1490_v36 }
 0x18d   :  { %v2324_v0 = vpop.eup %2323 }
 0x18e   :  { %v2326_v10 = vpop.eup %2325  ;;  %v1690_v57 = vmul.f32 %v2324_v0, %v2318_v32  ;;  %v1666_v44 = vadd.f32 %v1650_v55, %v1634_v19 }
 0x18f   :  { %v2328_v48 = vpop.eup %2327  ;;  %v1491_v21 = vadd.f32 1.0, %v2326_v10 }
 0x190   :  { %v2330_v29 = vpop.eup %2329  ;;  %1706 = vst [vmem:[%s3461_s4 + $0x10] sm:$0xff] %v1690_v57  ;;  %2349 = vtanh.f32 %v1666_v44  ;;  %1730 = vst [vmem:[%s3460_s5 + $0x50] sm:$0xff] %v1666_v44  ;;  %v1651_v28 = vmul.f32 %v2328_v48, %v3354_v35 }
 0x191   :  { %v2332_v6 = vpop.eup %2331  ;;  %v1691_v62 = vmul.f32 %v2330_v29, %v2322_v18  ;;  %2351 = vrcp.f32 %v1491_v21 }
 0x192   :  { %v2334_v63 = vpop.eup %2333  ;;  %v1667_v30 = vadd.f32 %v1651_v28, %v1635_v11 }
 0x193   :  { %v2336_v47 = vpop.eup %2335  ;;  %1707 = vst [vmem:[%s3461_s4 + $0x18] sm:$0xff] %v1691_v62  ;;  %v1494_v9 = vadd.f32 1.0, %v2334_v63 }
 0x194   :  { %v2338_v15 = vpop.eup %2337  ;;  %2353 = vtanh.f32 %v1667_v30  ;;  %1731 = vst [vmem:[%s3460_s5 + $0x58] sm:$0xff] %v1667_v30  ;;  %v1654_v35 = vmul.f32 %v2336_v47, %v3358_v22 }
 0x195   :  { %v2340_v12 = vpop.eup %2339  ;;  %v1694_v43 = vmul.f32 %v2338_v15, %v2332_v6  ;;  %2355 = vrcp.f32 %v1494_v9 }
 0x196   :  { %v2342_v41 = vpop.eup %2341  ;;  %v1670_v38 = vadd.f32 %v1654_v35, %v1638_v56 }
 0x197   :  { %v2344_v34 = vpop.eup %2343  ;;  %1710 = vst [vmem:[%s3461_s4 + $0x30] sm:$0xff] %v1694_v43  ;;  %v1495_v54 = vadd.f32 1.0, %v2342_v41 }
 0x198   :  { %v2346_v27 = vpop.eup %2345  ;;  %2357 = vtanh.f32 %v1670_v38  ;;  %1734 = vst [vmem:[%s3460_s5 + $0x70] sm:$0xff] %v1670_v38  ;;  %v1655_v22 = vmul.f32 %v2344_v34, %v3360_v60 }
 0x199   :  { %v1695_v5 = vmul.f32 %v2346_v27, %v2340_v12  ;;  %2359 = vrcp.f32 %v1495_v54  ;;  %v2348_v24 = vpop.eup %2347 }
 0x19a   :  { %v1671_v52 = vadd.f32 %v1655_v22, %v1639_v45 }
 0x19b   :  { %1711 = vst [vmem:[%s3461_s4 + $0x38] sm:$0xff] %v1695_v5 }
 0x19c   :  { %2361 = vtanh.f32 %v1671_v52  ;;  %1735 = vst [vmem:[%s3460_s5 + $0x78] sm:$0xff] %v1671_v52 }
 0x19d   :  { %v2350_v20 = vpop.eup %2349 }
 0x19e   :  { %v1698_v58 = vmul.f32 %v2350_v20, %v2348_v24  ;;  %v2352_v51 = vpop.eup %2351 }
 0x1a0   :  { %1714 = vst [vmem:[%s3461_s4 + $0x50] sm:$0xff] %v1698_v58 }
 0x1a1   :  { %v2354_v60 = vpop.eup %2353 }
 0x1a2   :  { %v1699_v31 = vmul.f32 %v2354_v60, %v2352_v51  ;;  %v2356_v33 = vpop.eup %2355 }
 0x1a4   :  { %1715 = vst [vmem:[%s3461_s4 + $0x58] sm:$0xff] %v1699_v31 }
 0x1a5   :  { %v2358_v8 = vpop.eup %2357 }
 0x1a6   :  { %v1702_v3 = vmul.f32 %v2358_v8, %v2356_v33  ;;  %v2360_v14 = vpop.eup %2359 }
 0x1a8   :  { %1718 = vst [vmem:[%s3461_s4 + $0x70] sm:$0xff] %v1702_v3 }
 0x1a9   :  { %v2362_v25 = vpop.eup %2361 }
 0x1aa   :  { %v1703_v50 = vmul.f32 %v2362_v25, %v2360_v14 }
 0x1ac   :  { %1719 = vst [vmem:[%s3461_s4 + $0x78] sm:$0xff] %v1703_v50 }

</bundles_post_ra>
